<compile_context>
chip_gen: v5e
topology: v5e:2x2
jax: 0.10.0
libtpu: 0.0.40
codegen_flags: <defaults>
</compile_context>

<pallas_src>
import jax
import jax.numpy as jnp
from jax.experimental import pallas as pl
from jax.experimental.pallas import tpu as pltpu

# ------------------------- config -------------------------
IMG = 32
PATCH = 16
CH = 3
GP = IMG // PATCH            # 2 patches per side
NP = GP * GP                 # 4 patches
S = NP + 1                   # 5 tokens (CLS + patches)
HIDDEN = 64
HEADS = 4
DH = HIDDEN // HEADS         # 16
LAYERS = 2
INTER = 128
CLASSES = 2
BATCH = 2
LN_EPS = 1e-12               # HF ViT layer_norm_eps
SCALE = 1.0 / (DH ** 0.5)
MXD = jnp.bfloat16           # MXU operand dtype (accumulation + epilogues stay f32)

# const_h row layout: 0 patch_b | 1 cls | 2 .. 1+S pos | 2+S lnf_gamma | 3+S lnf_beta
# layer_vecs row layout: 0 ln1_g | 1 ln1_b | 2 ln2_g | 3 ln2_b | 4 o_b | 5 fc2_b
# layer_wide row layout: 0 qkv_b (3H) | 1 [fc1_b (INTER) | zero pad]


# ------------------------- in-kernel helpers -------------------------
def _gelu_exact(y):
    # Exact (erf-based) GELU as used by HF ViT ("gelu"); erf via A&S 7.1.26 rational approx
    # (abs err ~1.5e-7) using only VPU/EUP-supported ops.  Kept in f32 (v5e has no bf16 VPU).
    z = y * 0.7071067811865476
    az = jnp.abs(z)
    t = 1.0 / (1.0 + 0.3275911 * az)
    poly = t * (0.254829592 + t * (-0.284496736 + t * (1.421413741
                + t * (-1.453152027 + t * 1.061405429))))
    erf_abs = 1.0 - poly * jnp.exp(-az * az)
    erf = jnp.where(z >= 0.0, erf_abs, -erf_abs)
    return 0.5 * y * (1.0 + erf)


def _ln(x, g, b):
    # LayerNorm over the last (lane) axis, f32.
    mu = jnp.mean(x, axis=-1, keepdims=True)
    var = jnp.mean(jnp.square(x - mu), axis=-1, keepdims=True)
    return (x - mu) * jax.lax.rsqrt(var + LN_EPS) * g + b


# ------------------------- the one kernel -------------------------
def _vit_kernel(patches_ref, pw_ref, const_ref,
                qkvw_ref, ow_ref, fc1w_ref, fc2w_ref,
                vecs_ref, wide_ref, head_ref,
                o_ref, h_scr):
    # One grid step == one transformer layer.  Residual stream (BATCH*S, HIDDEN) lives in
    # h_scr (VMEM) across grid steps; per-layer weights arrive via stacked BlockSpecs.
    layer = pl.program_id(0)

    # ---- layer 0: patch embedding + CLS concat + position add, straight into the residual ----
    @pl.when(layer == 0)
    def _embed():
        emb = jnp.dot(patches_ref[...], pw_ref[...],
                      preferred_element_type=jnp.float32)           # (B*NP, H), one matmul
        cls_tok = const_ref[1:2, :] + const_ref[2:3, :]             # cls + pos[0]   (1, H)
        add_p = const_ref[0:1, :] + const_ref[3:3 + NP, :]          # patch_b + pos[1:] (NP, H)
        rows = []
        for b in range(BATCH):
            rows.append(cls_tok)
            rows.append(emb[b * NP:(b + 1) * NP, :] + add_p)
        h_scr[...] = jnp.concatenate(rows, axis=0)                  # one full-slab store

    # ---- per-layer packed small vectors ----
    ln1_g = vecs_ref[0:1, :]
    ln1_b = vecs_ref[1:2, :]
    ln2_g = vecs_ref[2:3, :]
    ln2_b = vecs_ref[3:4, :]
    o_b = vecs_ref[4:5, :]
    fc2_b = vecs_ref[5:6, :]
    qkv_b = wide_ref[0:1, :]                 # (1, 3H)
    fc1_b = wide_ref[1:2, 0:INTER]           # (1, INTER)

    h = h_scr[...]                           # (B*S, H) f32 residual slab

    # ---- pre-norm self-attention: QKV for both batches in ONE matmul ----
    hn = _ln(h, ln1_g, ln1_b)
    qkv = jnp.dot(hn.astype(MXD), qkvw_ref[...],
                  preferred_element_type=jnp.float32) + qkv_b       # (B*S, 3H) f32

    # Per-(batch, head) score/context dots in bf16; contexts concatenated in registers
    # (no VMEM scratch, no lane-masked stores), then one merged output projection.
    ctx_parts = []
    for b in range(BATCH):
        r = b * S
        q_b = qkv[r:r + S, 0:HIDDEN].astype(MXD)                    # (S, H) bf16
        k_b = qkv[r:r + S, HIDDEN:2 * HIDDEN].astype(MXD)
        v_b = qkv[r:r + S, 2 * HIDDEN:3 * HIDDEN].astype(MXD)
        heads = []
        for hh in range(HEADS):
            c = hh * DH
            s = jax.lax.dot_general(q_b[:, c:c + DH], k_b[:, c:c + DH],
                                    (((1,), (1,)), ((), ())),
                                    preferred_element_type=jnp.float32) * SCALE   # (S, S) f32
            m = jnp.max(s, axis=-1, keepdims=True)
            p = jnp.exp(s - m)
            p = p * pl.reciprocal(jnp.sum(p, axis=-1, keepdims=True), approx=True)
            heads.append(jnp.dot(p.astype(MXD), v_b[:, c:c + DH],
                                 preferred_element_type=jnp.float32))             # (S, DH)
        ctx_parts.append(jnp.concatenate(heads, axis=1))            # (S, H) lane-concat
    ctx = jnp.concatenate(ctx_parts, axis=0)                        # (B*S, H) sublane-concat

    h = h + jnp.dot(ctx.astype(MXD), ow_ref[...],
                    preferred_element_type=jnp.float32) + o_b       # merged output projection

    # ---- pre-norm MLP: fc1 + exact GELU + fc2, batches merged ----
    hn2 = _ln(h, ln2_g, ln2_b)
    m1 = _gelu_exact(jnp.dot(hn2.astype(MXD), fc1w_ref[...],
                             preferred_element_type=jnp.float32) + fc1_b)
    h = h + jnp.dot(m1.astype(MXD), fc2w_ref[...],
                    preferred_element_type=jnp.float32) + fc2_b
    h_scr[...] = h

    # ---- final LayerNorm + CLS pick + classifier head, fused into the last layer step ----
    @pl.when(layer == pl.num_programs(0) - 1)
    def _head():
        # LN is per-row, so normalizing only the CLS rows matches LN(all rows)[:, 0].
        cls_rows = jnp.concatenate([h[b * S:b * S + 1, :] for b in range(BATCH)], axis=0)
        cls_ln = _ln(cls_rows, const_ref[2 + S:3 + S, :], const_ref[3 + S:4 + S, :])
        o_ref[...] = jnp.dot(cls_ln, head_ref[0:HIDDEN, :],
                             preferred_element_type=jnp.float32) + head_ref[HIDDEN:HIDDEN + 1, :]


# ------------------------- BlockSpec helpers -------------------------
def _stacked(*tail):
    # Per-layer stacked parameter (LAYERS, *tail): leading axis selected by the grid index.
    return pl.BlockSpec((None,) + tail, lambda l: (l,) + (0,) * len(tail))


def _shared(*shape):
    # Layer-independent input: same (full) block every grid step -> DMA'd only once.
    return pl.BlockSpec(shape, lambda l: (0,) * len(shape))


# ------------------------- params -------------------------
def init_params(key):
    def nrm(k, shape, dtype=jnp.float32):
        return (0.02 * jax.random.normal(k, shape, jnp.float32)).astype(dtype)

    k = jax.random.split(key, 8)

    # Packed shared constants (S+4, H): patch bias, CLS token, position embeddings, final LN.
    const_h = jnp.concatenate([
        jnp.zeros((1, HIDDEN), jnp.float32),      # patch-embedding conv bias
        nrm(k[1], (1, HIDDEN)),                   # CLS token
        nrm(k[2], (S, HIDDEN)),                   # position embeddings (CLS + patches)
        jnp.ones((1, HIDDEN), jnp.float32),       # final LayerNorm gamma
        jnp.zeros((1, HIDDEN), jnp.float32),      # final LayerNorm beta
    ], axis=0)

    # Packed per-layer LN gammas/betas + small biases (LAYERS, 6, H).
    one_row = jnp.ones((LAYERS, 1, HIDDEN), jnp.float32)
    zero_row = jnp.zeros((LAYERS, 1, HIDDEN), jnp.float32)
    layer_vecs = jnp.concatenate(
        [one_row, zero_row, one_row, zero_row, zero_row, zero_row], axis=1)

    # Packed per-layer wide biases (LAYERS, 2, 3H): row0 qkv_b, row1 [fc1_b | pad].
    layer_wide = jnp.zeros((LAYERS, 2, 3 * HIDDEN), jnp.float32)

    # Classifier weight with the bias packed as the last row (HIDDEN+1, CLASSES).
    head_w = jnp.concatenate([nrm(k[7], (HIDDEN, CLASSES)),
                              jnp.zeros((1, CLASSES), jnp.float32)], axis=0)

    return {
        # Conv2d(CH, HIDDEN, kernel=PATCH, stride=PATCH) as a matmul weight of shape
        # (CH*PATCH*PATCH, HIDDEN) with (c, kh, kw) flatten order (PyTorch contraction order).
        "patch_w": nrm(k[0], (CH * PATCH * PATCH, HIDDEN), MXD),
        "const_h": const_h,
        # Per-layer weights stacked along a leading LAYERS axis; QKV fused into one matrix.
        "qkv_w": nrm(k[3], (LAYERS, HIDDEN, 3 * HIDDEN), MXD),
        "o_w": nrm(k[4], (LAYERS, HIDDEN, HIDDEN), MXD),
        "fc1_w": nrm(k[5], (LAYERS, HIDDEN, INTER), MXD),
        "fc2_w": nrm(k[6], (LAYERS, INTER, HIDDEN), MXD),
        "layer_vecs": layer_vecs,
        "layer_wide": layer_wide,
        "head_w": head_w,
    }


# ------------------------- forward -------------------------
def vit_forward(params, x):
    # x: NCHW (BATCH, CH, IMG, IMG) float32, exactly like the PyTorch module.
    # im2col (pure layout glue, stays in XLA) with (c, kh, kw) flatten order, cast bf16 to
    # halve the patch DMA into the kernel.
    patches = x.reshape(BATCH, CH, GP, PATCH, GP, PATCH)
    patches = patches.transpose(0, 2, 4, 1, 3, 5)                  # (B, gh, gw, C, kh, kw)
    patches = patches.reshape(BATCH * NP, CH * PATCH * PATCH).astype(MXD)

    grid_spec = pltpu.PrefetchScalarGridSpec(
        num_scalar_prefetch=0,
        grid=(LAYERS,),
        in_specs=[
            _shared(BATCH * NP, CH * PATCH * PATCH),   # patches (used only at layer 0)
            _shared(CH * PATCH * PATCH, HIDDEN),       # patch embedding weight
            _shared(S + 4, HIDDEN),                    # packed embed + final-LN constants
            _stacked(HIDDEN, 3 * HIDDEN),              # qkv_w (fused)
            _stacked(HIDDEN, HIDDEN),                  # o_w
            _stacked(HIDDEN, INTER),                   # fc1_w
            _stacked(INTER, HIDDEN),                   # fc2_w
            _stacked(6, HIDDEN),                       # packed per-layer LN/bias vectors
            _stacked(2, 3 * HIDDEN),                   # packed qkv_b / fc1_b
            _shared(HIDDEN + 1, CLASSES),              # classifier weight + bias
        ],
        out_specs=pl.BlockSpec((BATCH, CLASSES), lambda l: (0, 0)),
        scratch_shapes=[
            pltpu.VMEM((BATCH * S, HIDDEN), jnp.float32),   # residual token stream
        ],
    )
    logits = pl.pallas_call(
        _vit_kernel,
        grid_spec=grid_spec,
        out_shape=jax.ShapeDtypeStruct((BATCH, CLASSES), jnp.float32),
        compiler_params=pltpu.CompilerParams(
            # Layer axis is a sequential carry over the VMEM residual stream -> "arbitrary".
            dimension_semantics=("arbitrary",),
            vmem_limit_bytes=32 * 1024 * 1024,
        ),
    )(
        patches, params["patch_w"], params["const_h"],
        params["qkv_w"], params["o_w"], params["fc1_w"], params["fc2_w"],
        params["layer_vecs"], params["layer_wide"], params["head_w"],
    )
    return logits  # (BATCH, CLASSES)


# ------------------------- main -------------------------
if __name__ == "__main__":
    key = jax.random.PRNGKey(0)
    k_params, k_x = jax.random.split(key)
    params = init_params(k_params)
    x = jax.random.normal(k_x, (BATCH, CH, IMG, IMG), jnp.float32)  # NCHW like PyTorch

    fwd = jax.jit(vit_forward)
    logits = fwd(params, x)
    jax.block_until_ready(logits)

    assert logits.shape == (BATCH, CLASSES) and logits.dtype == jnp.float32
    assert bool(jnp.all(jnp.isfinite(logits)))
    print("KERNEL_OK")
</pallas_src>

<mosaic_0001>
module attributes {stable_mosaic.version = 11 : i64} {
  func.func @_vit_kernel(%arg0: i32, %arg1: memref<8x768xbf16, #tpu.memory_space<vmem>>, %arg2: memref<768x64xbf16, #tpu.memory_space<vmem>>, %arg3: memref<9x64xf32, #tpu.memory_space<vmem>>, %arg4: memref<1x64x192xbf16, #tpu.memory_space<vmem>>, %arg5: memref<1x64x64xbf16, #tpu.memory_space<vmem>>, %arg6: memref<1x64x128xbf16, #tpu.memory_space<vmem>>, %arg7: memref<1x128x64xbf16, #tpu.memory_space<vmem>>, %arg8: memref<1x6x64xf32, #tpu.memory_space<vmem>>, %arg9: memref<1x2x192xf32, #tpu.memory_space<vmem>>, %arg10: memref<65x2xf32, #tpu.memory_space<vmem>>, %arg11: memref<2x2xf32, #tpu.memory_space<vmem>>, %arg12: memref<10x64xf32, #tpu.memory_space<vmem>>) attributes {dimension_semantics = [#tpu.dimension_semantics<arbitrary>], iteration_bounds = array<i64: 2>, scalar_prefetch = 0 : i64, scratch_operands = 1 : i64, tpu.core_type = #tpu.core_type<tc>, window_params = [{pipeline_mode = #tpu.pipeline_mode<synchronous>, transform_indices = @transform_0, window_bounds = array<i64: 8, 768>}, {pipeline_mode = #tpu.pipeline_mode<synchronous>, transform_indices = @transform_1, window_bounds = array<i64: 768, 64>}, {pipeline_mode = #tpu.pipeline_mode<synchronous>, transform_indices = @transform_2, window_bounds = array<i64: 9, 64>}, {transform_indices = @transform_3, window_bounds = array<i64: 1, 64, 192>}, {transform_indices = @transform_4, window_bounds = array<i64: 1, 64, 64>}, {transform_indices = @transform_5, window_bounds = array<i64: 1, 64, 128>}, {transform_indices = @transform_6, window_bounds = array<i64: 1, 128, 64>}, {transform_indices = @transform_7, window_bounds = array<i64: 1, 6, 64>}, {transform_indices = @transform_8, window_bounds = array<i64: 1, 2, 192>}, {pipeline_mode = #tpu.pipeline_mode<synchronous>, transform_indices = @transform_9, window_bounds = array<i64: 65, 2>}, {pipeline_mode = #tpu.pipeline_mode<synchronous>, transform_indices = @transform_10, window_bounds = array<i64: 2, 2>}]} {
    %c0_i32 = arith.constant 0 : i32
    %0 = arith.cmpi eq, %arg0, %c0_i32 : i32
    %1 = arith.extui %0 : i1 to i32
    %c0_i32_0 = arith.constant 0 : i32
    %2 = arith.cmpi ne, %1, %c0_i32_0 : i32
    scf.if %2 {
      %c0_104 = arith.constant 0 : index
      %c0_105 = arith.constant 0 : index
      %293 = vector.load %arg1[%c0_104, %c0_105] : memref<8x768xbf16, #tpu.memory_space<vmem>>, vector<8x768xbf16>
      %c0_106 = arith.constant 0 : index
      %c0_107 = arith.constant 0 : index
      %294 = vector.load %arg2[%c0_106, %c0_107] : memref<768x64xbf16, #tpu.memory_space<vmem>>, vector<768x64xbf16>
      %cst_108 = arith.constant dense<0.000000e+00> : vector<8x64xf32>
      %295 = tpu.matmul %293, %294, %cst_108 {dimension_numbers = #tpu.dot_dimension_numbers<[1], [0], [0], [1], [0, 0, 1, 1], [], []>} : vector<8x768xbf16>, vector<768x64xbf16>, vector<8x64xf32> -> vector<8x64xf32>
      %c1_109 = arith.constant 1 : index
      %c0_110 = arith.constant 0 : index
      %296 = vector.load %arg3[%c1_109, %c0_110] : memref<9x64xf32, #tpu.memory_space<vmem>>, vector<1x64xf32>
      %c2_111 = arith.constant 2 : index
      %c0_112 = arith.constant 0 : index
      %297 = vector.load %arg3[%c2_111, %c0_112] : memref<9x64xf32, #tpu.memory_space<vmem>>, vector<1x64xf32>
      %298 = arith.addf %296, %297 : vector<1x64xf32>
      %c0_113 = arith.constant 0 : index
      %c0_114 = arith.constant 0 : index
      %299 = vector.load %arg3[%c0_113, %c0_114] : memref<9x64xf32, #tpu.memory_space<vmem>>, vector<1x64xf32>
      %c3_115 = arith.constant 3 : index
      %c0_116 = arith.constant 0 : index
      %300 = vector.load %arg3[%c3_115, %c0_116] : memref<9x64xf32, #tpu.memory_space<vmem>>, vector<4x64xf32>
      %301 = vector.broadcast %299 : vector<1x64xf32> to vector<4x64xf32>
      %302 = arith.addf %301, %300 : vector<4x64xf32>
      %303 = vector.extract_strided_slice %295 {offsets = [0, 0], sizes = [4, 64], strides = [1, 1]} : vector<8x64xf32> to vector<4x64xf32>
      %304 = arith.addf %303, %302 : vector<4x64xf32>
      %305 = vector.extract_strided_slice %295 {offsets = [4, 0], sizes = [4, 64], strides = [1, 1]} : vector<8x64xf32> to vector<4x64xf32>
      %306 = arith.addf %305, %302 : vector<4x64xf32>
      %307 = tpu.concatenate %298, %304, %298, %306 in 0 : vector<1x64xf32>, vector<4x64xf32>, vector<1x64xf32>, vector<4x64xf32> -> vector<10x64xf32>
      %c0_117 = arith.constant 0 : index
      %c0_118 = arith.constant 0 : index
      %308 = vector.load %arg12[%c0_117, %c0_118] : memref<10x64xf32, #tpu.memory_space<vmem>>, vector<10x64xf32>
      tpu.vector_store %arg12[%c0_117, %c0_118], %307 {strides = array<i32>} : memref<10x64xf32, #tpu.memory_space<vmem>>, vector<10x64xf32>,
    } else {
    }
    %c0 = arith.constant 0 : index
    %c0_1 = arith.constant 0 : index
    %c0_2 = arith.constant 0 : index
    %3 = vector.load %arg8[%c0, %c0_1, %c0_2] : memref<1x6x64xf32, #tpu.memory_space<vmem>>, vector<1x1x64xf32>
    %4 = vector.shape_cast %3 : vector<1x1x64xf32> to vector<1x64xf32>
    %c0_3 = arith.constant 0 : index
    %c1 = arith.constant 1 : index
    %c0_4 = arith.constant 0 : index
    %5 = vector.load %arg8[%c0_3, %c1, %c0_4] : memref<1x6x64xf32, #tpu.memory_space<vmem>>, vector<1x1x64xf32>
    %6 = vector.shape_cast %5 : vector<1x1x64xf32> to vector<1x64xf32>
    %c0_5 = arith.constant 0 : index
    %c2 = arith.constant 2 : index
    %c0_6 = arith.constant 0 : index
    %7 = vector.load %arg8[%c0_5, %c2, %c0_6] : memref<1x6x64xf32, #tpu.memory_space<vmem>>, vector<1x1x64xf32>
    %8 = vector.shape_cast %7 : vector<1x1x64xf32> to vector<1x64xf32>
    %c0_7 = arith.constant 0 : index
    %c3 = arith.constant 3 : index
    %c0_8 = arith.constant 0 : index
    %9 = vector.load %arg8[%c0_7, %c3, %c0_8] : memref<1x6x64xf32, #tpu.memory_space<vmem>>, vector<1x1x64xf32>
    %10 = vector.shape_cast %9 : vector<1x1x64xf32> to vector<1x64xf32>
    %c0_9 = arith.constant 0 : index
    %c4 = arith.constant 4 : index
    %c0_10 = arith.constant 0 : index
    %11 = vector.load %arg8[%c0_9, %c4, %c0_10] : memref<1x6x64xf32, #tpu.memory_space<vmem>>, vector<1x1x64xf32>
    %12 = vector.shape_cast %11 : vector<1x1x64xf32> to vector<1x64xf32>
    %c0_11 = arith.constant 0 : index
    %c5 = arith.constant 5 : index
    %c0_12 = arith.constant 0 : index
    %13 = vector.load %arg8[%c0_11, %c5, %c0_12] : memref<1x6x64xf32, #tpu.memory_space<vmem>>, vector<1x1x64xf32>
    %14 = vector.shape_cast %13 : vector<1x1x64xf32> to vector<1x64xf32>
    %c0_13 = arith.constant 0 : index
    %c0_14 = arith.constant 0 : index
    %c0_15 = arith.constant 0 : index
    %15 = vector.load %arg9[%c0_13, %c0_14, %c0_15] : memref<1x2x192xf32, #tpu.memory_space<vmem>>, vector<1x1x192xf32>
    %16 = vector.shape_cast %15 : vector<1x1x192xf32> to vector<1x192xf32>
    %c0_16 = arith.constant 0 : index
    %c1_17 = arith.constant 1 : index
    %c0_18 = arith.constant 0 : index
    %17 = vector.load %arg9[%c0_16, %c1_17, %c0_18] : memref<1x2x192xf32, #tpu.memory_space<vmem>>, vector<1x1x128xf32>
    %18 = vector.shape_cast %17 : vector<1x1x128xf32> to vector<1x128xf32>
    %c0_19 = arith.constant 0 : index
    %c0_20 = arith.constant 0 : index
    %19 = vector.load %arg12[%c0_19, %c0_20] : memref<10x64xf32, #tpu.memory_space<vmem>>, vector<10x64xf32>
    %cst = arith.constant dense<0.000000e+00> : vector<10xf32>
    %20 = vector.multi_reduction <add>, %19, %cst [1] : vector<10x64xf32> to vector<10xf32>
    %21 = vector.shape_cast %20 : vector<10xf32> to vector<10x1xf32>
    %cst_21 = arith.constant 6.400000e+01 : f32
    %22 = vector.broadcast %cst_21 : f32 to vector<10x1xf32>
    %23 = arith.divf %21, %22 : vector<10x1xf32>
    %24 = vector.broadcast %23 : vector<10x1xf32> to vector<10x64xf32>
    %25 = arith.subf %19, %24 : vector<10x64xf32>
    %26 = arith.mulf %25, %25 : vector<10x64xf32>
    %cst_22 = arith.constant dense<0.000000e+00> : vector<10xf32>
    %27 = vector.multi_reduction <add>, %26, %cst_22 [1] : vector<10x64xf32> to vector<10xf32>
    %28 = vector.shape_cast %27 : vector<10xf32> to vector<10x1xf32>
    %cst_23 = arith.constant 6.400000e+01 : f32
    %29 = vector.broadcast %cst_23 : f32 to vector<10x1xf32>
    %30 = arith.divf %28, %29 : vector<10x1xf32>
    %31 = vector.broadcast %23 : vector<10x1xf32> to vector<10x64xf32>
    %32 = arith.subf %19, %31 : vector<10x64xf32>
    %cst_24 = arith.constant 9.99999996E-13 : f32
    %33 = vector.broadcast %cst_24 : f32 to vector<10x1xf32>
    %34 = arith.addf %30, %33 : vector<10x1xf32>
    %35 = math.rsqrt %34 : vector<10x1xf32>
    %36 = vector.broadcast %35 : vector<10x1xf32> to vector<10x64xf32>
    %37 = arith.mulf %32, %36 : vector<10x64xf32>
    %38 = vector.broadcast %4 : vector<1x64xf32> to vector<10x64xf32>
    %39 = arith.mulf %37, %38 : vector<10x64xf32>
    %40 = vector.broadcast %6 : vector<1x64xf32> to vector<10x64xf32>
    %41 = arith.addf %39, %40 : vector<10x64xf32>
    %42 = arith.truncf %41 : vector<10x64xf32> to vector<10x64xbf16>
    %c0_25 = arith.constant 0 : index
    %c0_26 = arith.constant 0 : index
    %c0_27 = arith.constant 0 : index
    %43 = vector.load %arg4[%c0_25, %c0_26, %c0_27] : memref<1x64x192xbf16, #tpu.memory_space<vmem>>, vector<1x64x192xbf16>
    %44 = vector.shape_cast %43 : vector<1x64x192xbf16> to vector<64x192xbf16>
    %cst_28 = arith.constant dense<0.000000e+00> : vector<10x192xf32>
    %45 = tpu.matmul %42, %44, %cst_28 {dimension_numbers = #tpu.dot_dimension_numbers<[1], [0], [0], [1], [0, 0, 1, 1], [], []>} : vector<10x64xbf16>, vector<64x192xbf16>, vector<10x192xf32> -> vector<10x192xf32>
    %46 = vector.broadcast %16 : vector<1x192xf32> to vector<10x192xf32>
    %47 = arith.addf %45, %46 : vector<10x192xf32>
    %48 = vector.extract_strided_slice %47 {offsets = [0, 0], sizes = [5, 64], strides = [1, 1]} : vector<10x192xf32> to vector<5x64xf32>
    %49 = arith.truncf %48 : vector<5x64xf32> to vector<5x64xbf16>
    %50 = vector.extract_strided_slice %47 {offsets = [0, 64], sizes = [5, 64], strides = [1, 1]} : vector<10x192xf32> to vector<5x64xf32>
    %51 = arith.truncf %50 : vector<5x64xf32> to vector<5x64xbf16>
    %52 = vector.extract_strided_slice %47 {offsets = [0, 128], sizes = [5, 64], strides = [1, 1]} : vector<10x192xf32> to vector<5x64xf32>
    %53 = arith.truncf %52 : vector<5x64xf32> to vector<5x64xbf16>
    %54 = vector.extract_strided_slice %49 {offsets = [0, 0], sizes = [5, 16], strides = [1, 1]} : vector<5x64xbf16> to vector<5x16xbf16>
    %55 = vector.extract_strided_slice %51 {offsets = [0, 0], sizes = [5, 16], strides = [1, 1]} : vector<5x64xbf16> to vector<5x16xbf16>
    %cst_29 = arith.constant dense<0.000000e+00> : vector<5x5xf32>
    %56 = tpu.matmul %54, %55, %cst_29 {dimension_numbers = #tpu.dot_dimension_numbers<[1], [1], [0], [0], [0, 0, 1, 0], [], []>} : vector<5x16xbf16>, vector<5x16xbf16>, vector<5x5xf32> -> vector<5x5xf32>
    %cst_30 = arith.constant 2.500000e-01 : f32
    %57 = vector.broadcast %cst_30 : f32 to vector<5x5xf32>
    %58 = arith.mulf %56, %57 : vector<5x5xf32>
    %cst_31 = arith.constant dense<0xFF800000> : vector<5xf32>
    %59 = vector.multi_reduction <maximumf>, %58, %cst_31 [1] : vector<5x5xf32> to vector<5xf32>
    %60 = vector.shape_cast %59 : vector<5xf32> to vector<5x1xf32>
    %61 = vector.broadcast %60 : vector<5x1xf32> to vector<5x5xf32>
    %62 = arith.subf %58, %61 : vector<5x5xf32>
    %63 = math.exp %62 : vector<5x5xf32>
    %cst_32 = arith.constant dense<0.000000e+00> : vector<5xf32>
    %64 = vector.multi_reduction <add>, %63, %cst_32 [1] : vector<5x5xf32> to vector<5xf32>
    %65 = vector.shape_cast %64 : vector<5xf32> to vector<5x1xf32>
    %66 = tpu.reciprocal %65 {approx = true} : vector<5x1xf32> -> vector<5x1xf32>
    %67 = vector.broadcast %66 : vector<5x1xf32> to vector<5x5xf32>
    %68 = arith.mulf %63, %67 : vector<5x5xf32>
    %69 = arith.truncf %68 : vector<5x5xf32> to vector<5x5xbf16>
    %70 = vector.extract_strided_slice %53 {offsets = [0, 0], sizes = [5, 16], strides = [1, 1]} : vector<5x64xbf16> to vector<5x16xbf16>
    %cst_33 = arith.constant dense<0.000000e+00> : vector<5x16xf32>
    %71 = tpu.matmul %69, %70, %cst_33 {dimension_numbers = #tpu.dot_dimension_numbers<[1], [0], [0], [1], [0, 0, 1, 1], [], []>} : vector<5x5xbf16>, vector<5x16xbf16>, vector<5x16xf32> -> vector<5x16xf32>
    %72 = vector.extract_strided_slice %49 {offsets = [0, 16], sizes = [5, 16], strides = [1, 1]} : vector<5x64xbf16> to vector<5x16xbf16>
    %73 = vector.extract_strided_slice %51 {offsets = [0, 16], sizes = [5, 16], strides = [1, 1]} : vector<5x64xbf16> to vector<5x16xbf16>
    %cst_34 = arith.constant dense<0.000000e+00> : vector<5x5xf32>
    %74 = tpu.matmul %72, %73, %cst_34 {dimension_numbers = #tpu.dot_dimension_numbers<[1], [1], [0], [0], [0, 0, 1, 0], [], []>} : vector<5x16xbf16>, vector<5x16xbf16>, vector<5x5xf32> -> vector<5x5xf32>
    %cst_35 = arith.constant 2.500000e-01 : f32
    %75 = vector.broadcast %cst_35 : f32 to vector<5x5xf32>
    %76 = arith.mulf %74, %75 : vector<5x5xf32>
    %cst_36 = arith.constant dense<0xFF800000> : vector<5xf32>
    %77 = vector.multi_reduction <maximumf>, %76, %cst_36 [1] : vector<5x5xf32> to vector<5xf32>
    %78 = vector.shape_cast %77 : vector<5xf32> to vector<5x1xf32>
    %79 = vector.broadcast %78 : vector<5x1xf32> to vector<5x5xf32>
    %80 = arith.subf %76, %79 : vector<5x5xf32>
    %81 = math.exp %80 : vector<5x5xf32>
    %cst_37 = arith.constant dense<0.000000e+00> : vector<5xf32>
    %82 = vector.multi_reduction <add>, %81, %cst_37 [1] : vector<5x5xf32> to vector<5xf32>
    %83 = vector.shape_cast %82 : vector<5xf32> to vector<5x1xf32>
    %84 = tpu.reciprocal %83 {approx = true} : vector<5x1xf32> -> vector<5x1xf32>
    %85 = vector.broadcast %84 : vector<5x1xf32> to vector<5x5xf32>
    %86 = arith.mulf %81, %85 : vector<5x5xf32>
    %87 = arith.truncf %86 : vector<5x5xf32> to vector<5x5xbf16>
    %88 = vector.extract_strided_slice %53 {offsets = [0, 16], sizes = [5, 16], strides = [1, 1]} : vector<5x64xbf16> to vector<5x16xbf16>
    %cst_38 = arith.constant dense<0.000000e+00> : vector<5x16xf32>
    %89 = tpu.matmul %87, %88, %cst_38 {dimension_numbers = #tpu.dot_dimension_numbers<[1], [0], [0], [1], [0, 0, 1, 1], [], []>} : vector<5x5xbf16>, vector<5x16xbf16>, vector<5x16xf32> -> vector<5x16xf32>
    %90 = vector.extract_strided_slice %49 {offsets = [0, 32], sizes = [5, 16], strides = [1, 1]} : vector<5x64xbf16> to vector<5x16xbf16>
    %91 = vector.extract_strided_slice %51 {offsets = [0, 32], sizes = [5, 16], strides = [1, 1]} : vector<5x64xbf16> to vector<5x16xbf16>
    %cst_39 = arith.constant dense<0.000000e+00> : vector<5x5xf32>
    %92 = tpu.matmul %90, %91, %cst_39 {dimension_numbers = #tpu.dot_dimension_numbers<[1], [1], [0], [0], [0, 0, 1, 0], [], []>} : vector<5x16xbf16>, vector<5x16xbf16>, vector<5x5xf32> -> vector<5x5xf32>
    %cst_40 = arith.constant 2.500000e-01 : f32
    %93 = vector.broadcast %cst_40 : f32 to vector<5x5xf32>
    %94 = arith.mulf %92, %93 : vector<5x5xf32>
    %cst_41 = arith.constant dense<0xFF800000> : vector<5xf32>
    %95 = vector.multi_reduction <maximumf>, %94, %cst_41 [1] : vector<5x5xf32> to vector<5xf32>
    %96 = vector.shape_cast %95 : vector<5xf32> to vector<5x1xf32>
    %97 = vector.broadcast %96 : vector<5x1xf32> to vector<5x5xf32>
    %98 = arith.subf %94, %97 : vector<5x5xf32>
    %99 = math.exp %98 : vector<5x5xf32>
    %cst_42 = arith.constant dense<0.000000e+00> : vector<5xf32>
    %100 = vector.multi_reduction <add>, %99, %cst_42 [1] : vector<5x5xf32> to vector<5xf32>
    %101 = vector.shape_cast %100 : vector<5xf32> to vector<5x1xf32>
    %102 = tpu.reciprocal %101 {approx = true} : vector<5x1xf32> -> vector<5x1xf32>
    %103 = vector.broadcast %102 : vector<5x1xf32> to vector<5x5xf32>
    %104 = arith.mulf %99, %103 : vector<5x5xf32>
    %105 = arith.truncf %104 : vector<5x5xf32> to vector<5x5xbf16>
    %106 = vector.extract_strided_slice %53 {offsets = [0, 32], sizes = [5, 16], strides = [1, 1]} : vector<5x64xbf16> to vector<5x16xbf16>
    %cst_43 = arith.constant dense<0.000000e+00> : vector<5x16xf32>
    %107 = tpu.matmul %105, %106, %cst_43 {dimension_numbers = #tpu.dot_dimension_numbers<[1], [0], [0], [1], [0, 0, 1, 1], [], []>} : vector<5x5xbf16>, vector<5x16xbf16>, vector<5x16xf32> -> vector<5x16xf32>
    %108 = vector.extract_strided_slice %49 {offsets = [0, 48], sizes = [5, 16], strides = [1, 1]} : vector<5x64xbf16> to vector<5x16xbf16>
    %109 = vector.extract_strided_slice %51 {offsets = [0, 48], sizes = [5, 16], strides = [1, 1]} : vector<5x64xbf16> to vector<5x16xbf16>
    %cst_44 = arith.constant dense<0.000000e+00> : vector<5x5xf32>
    %110 = tpu.matmul %108, %109, %cst_44 {dimension_numbers = #tpu.dot_dimension_numbers<[1], [1], [0], [0], [0, 0, 1, 0], [], []>} : vector<5x16xbf16>, vector<5x16xbf16>, vector<5x5xf32> -> vector<5x5xf32>
    %cst_45 = arith.constant 2.500000e-01 : f32
    %111 = vector.broadcast %cst_45 : f32 to vector<5x5xf32>
    %112 = arith.mulf %110, %111 : vector<5x5xf32>
    %cst_46 = arith.constant dense<0xFF800000> : vector<5xf32>
    %113 = vector.multi_reduction <maximumf>, %112, %cst_46 [1] : vector<5x5xf32> to vector<5xf32>
    %114 = vector.shape_cast %113 : vector<5xf32> to vector<5x1xf32>
    %115 = vector.broadcast %114 : vector<5x1xf32> to vector<5x5xf32>
    %116 = arith.subf %112, %115 : vector<5x5xf32>
    %117 = math.exp %116 : vector<5x5xf32>
    %cst_47 = arith.constant dense<0.000000e+00> : vector<5xf32>
    %118 = vector.multi_reduction <add>, %117, %cst_47 [1] : vector<5x5xf32> to vector<5xf32>
    %119 = vector.shape_cast %118 : vector<5xf32> to vector<5x1xf32>
    %120 = tpu.reciprocal %119 {approx = true} : vector<5x1xf32> -> vector<5x1xf32>
    %121 = vector.broadcast %120 : vector<5x1xf32> to vector<5x5xf32>
    %122 = arith.mulf %117, %121 : vector<5x5xf32>
    %123 = arith.truncf %122 : vector<5x5xf32> to vector<5x5xbf16>
    %124 = vector.extract_strided_slice %53 {offsets = [0, 48], sizes = [5, 16], strides = [1, 1]} : vector<5x64xbf16> to vector<5x16xbf16>
    %cst_48 = arith.constant dense<0.000000e+00> : vector<5x16xf32>
    %125 = tpu.matmul %123, %124, %cst_48 {dimension_numbers = #tpu.dot_dimension_numbers<[1], [0], [0], [1], [0, 0, 1, 1], [], []>} : vector<5x5xbf16>, vector<5x16xbf16>, vector<5x16xf32> -> vector<5x16xf32>
    %126 = tpu.concatenate %71, %89, %107, %125 in 1 : vector<5x16xf32>, vector<5x16xf32>, vector<5x16xf32>, vector<5x16xf32> -> vector<5x64xf32>
    %127 = vector.extract_strided_slice %47 {offsets = [5, 0], sizes = [5, 64], strides = [1, 1]} : vector<10x192xf32> to vector<5x64xf32>
    %128 = arith.truncf %127 : vector<5x64xf32> to vector<5x64xbf16>
    %129 = vector.extract_strided_slice %47 {offsets = [5, 64], sizes = [5, 64], strides = [1, 1]} : vector<10x192xf32> to vector<5x64xf32>
    %130 = arith.truncf %129 : vector<5x64xf32> to vector<5x64xbf16>
    %131 = vector.extract_strided_slice %47 {offsets = [5, 128], sizes = [5, 64], strides = [1, 1]} : vector<10x192xf32> to vector<5x64xf32>
    %132 = arith.truncf %131 : vector<5x64xf32> to vector<5x64xbf16>
    %133 = vector.extract_strided_slice %128 {offsets = [0, 0], sizes = [5, 16], strides = [1, 1]} : vector<5x64xbf16> to vector<5x16xbf16>
    %134 = vector.extract_strided_slice %130 {offsets = [0, 0], sizes = [5, 16], strides = [1, 1]} : vector<5x64xbf16> to vector<5x16xbf16>
    %cst_49 = arith.constant dense<0.000000e+00> : vector<5x5xf32>
    %135 = tpu.matmul %133, %134, %cst_49 {dimension_numbers = #tpu.dot_dimension_numbers<[1], [1], [0], [0], [0, 0, 1, 0], [], []>} : vector<5x16xbf16>, vector<5x16xbf16>, vector<5x5xf32> -> vector<5x5xf32>
    %cst_50 = arith.constant 2.500000e-01 : f32
    %136 = vector.broadcast %cst_50 : f32 to vector<5x5xf32>
    %137 = arith.mulf %135, %136 : vector<5x5xf32>
    %cst_51 = arith.constant dense<0xFF800000> : vector<5xf32>
    %138 = vector.multi_reduction <maximumf>, %137, %cst_51 [1] : vector<5x5xf32> to vector<5xf32>
    %139 = vector.shape_cast %138 : vector<5xf32> to vector<5x1xf32>
    %140 = vector.broadcast %139 : vector<5x1xf32> to vector<5x5xf32>
    %141 = arith.subf %137, %140 : vector<5x5xf32>
    %142 = math.exp %141 : vector<5x5xf32>
    %cst_52 = arith.constant dense<0.000000e+00> : vector<5xf32>
    %143 = vector.multi_reduction <add>, %142, %cst_52 [1] : vector<5x5xf32> to vector<5xf32>
    %144 = vector.shape_cast %143 : vector<5xf32> to vector<5x1xf32>
    %145 = tpu.reciprocal %144 {approx = true} : vector<5x1xf32> -> vector<5x1xf32>
    %146 = vector.broadcast %145 : vector<5x1xf32> to vector<5x5xf32>
    %147 = arith.mulf %142, %146 : vector<5x5xf32>
    %148 = arith.truncf %147 : vector<5x5xf32> to vector<5x5xbf16>
    %149 = vector.extract_strided_slice %132 {offsets = [0, 0], sizes = [5, 16], strides = [1, 1]} : vector<5x64xbf16> to vector<5x16xbf16>
    %cst_53 = arith.constant dense<0.000000e+00> : vector<5x16xf32>
    %150 = tpu.matmul %148, %149, %cst_53 {dimension_numbers = #tpu.dot_dimension_numbers<[1], [0], [0], [1], [0, 0, 1, 1], [], []>} : vector<5x5xbf16>, vector<5x16xbf16>, vector<5x16xf32> -> vector<5x16xf32>
    %151 = vector.extract_strided_slice %128 {offsets = [0, 16], sizes = [5, 16], strides = [1, 1]} : vector<5x64xbf16> to vector<5x16xbf16>
    %152 = vector.extract_strided_slice %130 {offsets = [0, 16], sizes = [5, 16], strides = [1, 1]} : vector<5x64xbf16> to vector<5x16xbf16>
    %cst_54 = arith.constant dense<0.000000e+00> : vector<5x5xf32>
    %153 = tpu.matmul %151, %152, %cst_54 {dimension_numbers = #tpu.dot_dimension_numbers<[1], [1], [0], [0], [0, 0, 1, 0], [], []>} : vector<5x16xbf16>, vector<5x16xbf16>, vector<5x5xf32> -> vector<5x5xf32>
    %cst_55 = arith.constant 2.500000e-01 : f32
    %154 = vector.broadcast %cst_55 : f32 to vector<5x5xf32>
    %155 = arith.mulf %153, %154 : vector<5x5xf32>
    %cst_56 = arith.constant dense<0xFF800000> : vector<5xf32>
    %156 = vector.multi_reduction <maximumf>, %155, %cst_56 [1] : vector<5x5xf32> to vector<5xf32>
    %157 = vector.shape_cast %156 : vector<5xf32> to vector<5x1xf32>
    %158 = vector.broadcast %157 : vector<5x1xf32> to vector<5x5xf32>
    %159 = arith.subf %155, %158 : vector<5x5xf32>
    %160 = math.exp %159 : vector<5x5xf32>
    %cst_57 = arith.constant dense<0.000000e+00> : vector<5xf32>
    %161 = vector.multi_reduction <add>, %160, %cst_57 [1] : vector<5x5xf32> to vector<5xf32>
    %162 = vector.shape_cast %161 : vector<5xf32> to vector<5x1xf32>
    %163 = tpu.reciprocal %162 {approx = true} : vector<5x1xf32> -> vector<5x1xf32>
    %164 = vector.broadcast %163 : vector<5x1xf32> to vector<5x5xf32>
    %165 = arith.mulf %160, %164 : vector<5x5xf32>
    %166 = arith.truncf %165 : vector<5x5xf32> to vector<5x5xbf16>
    %167 = vector.extract_strided_slice %132 {offsets = [0, 16], sizes = [5, 16], strides = [1, 1]} : vector<5x64xbf16> to vector<5x16xbf16>
    %cst_58 = arith.constant dense<0.000000e+00> : vector<5x16xf32>
    %168 = tpu.matmul %166, %167, %cst_58 {dimension_numbers = #tpu.dot_dimension_numbers<[1], [0], [0], [1], [0, 0, 1, 1], [], []>} : vector<5x5xbf16>, vector<5x16xbf16>, vector<5x16xf32> -> vector<5x16xf32>
    %169 = vector.extract_strided_slice %128 {offsets = [0, 32], sizes = [5, 16], strides = [1, 1]} : vector<5x64xbf16> to vector<5x16xbf16>
    %170 = vector.extract_strided_slice %130 {offsets = [0, 32], sizes = [5, 16], strides = [1, 1]} : vector<5x64xbf16> to vector<5x16xbf16>
    %cst_59 = arith.constant dense<0.000000e+00> : vector<5x5xf32>
    %171 = tpu.matmul %169, %170, %cst_59 {dimension_numbers = #tpu.dot_dimension_numbers<[1], [1], [0], [0], [0, 0, 1, 0], [], []>} : vector<5x16xbf16>, vector<5x16xbf16>, vector<5x5xf32> -> vector<5x5xf32>
    %cst_60 = arith.constant 2.500000e-01 : f32
    %172 = vector.broadcast %cst_60 : f32 to vector<5x5xf32>
    %173 = arith.mulf %171, %172 : vector<5x5xf32>
    %cst_61 = arith.constant dense<0xFF800000> : vector<5xf32>
    %174 = vector.multi_reduction <maximumf>, %173, %cst_61 [1] : vector<5x5xf32> to vector<5xf32>
    %175 = vector.shape_cast %174 : vector<5xf32> to vector<5x1xf32>
    %176 = vector.broadcast %175 : vector<5x1xf32> to vector<5x5xf32>
    %177 = arith.subf %173, %176 : vector<5x5xf32>
    %178 = math.exp %177 : vector<5x5xf32>
    %cst_62 = arith.constant dense<0.000000e+00> : vector<5xf32>
    %179 = vector.multi_reduction <add>, %178, %cst_62 [1] : vector<5x5xf32> to vector<5xf32>
    %180 = vector.shape_cast %179 : vector<5xf32> to vector<5x1xf32>
    %181 = tpu.reciprocal %180 {approx = true} : vector<5x1xf32> -> vector<5x1xf32>
    %182 = vector.broadcast %181 : vector<5x1xf32> to vector<5x5xf32>
    %183 = arith.mulf %178, %182 : vector<5x5xf32>
    %184 = arith.truncf %183 : vector<5x5xf32> to vector<5x5xbf16>
    %185 = vector.extract_strided_slice %132 {offsets = [0, 32], sizes = [5, 16], strides = [1, 1]} : vector<5x64xbf16> to vector<5x16xbf16>
    %cst_63 = arith.constant dense<0.000000e+00> : vector<5x16xf32>
    %186 = tpu.matmul %184, %185, %cst_63 {dimension_numbers = #tpu.dot_dimension_numbers<[1], [0], [0], [1], [0, 0, 1, 1], [], []>} : vector<5x5xbf16>, vector<5x16xbf16>, vector<5x16xf32> -> vector<5x16xf32>
    %187 = vector.extract_strided_slice %128 {offsets = [0, 48], sizes = [5, 16], strides = [1, 1]} : vector<5x64xbf16> to vector<5x16xbf16>
    %188 = vector.extract_strided_slice %130 {offsets = [0, 48], sizes = [5, 16], strides = [1, 1]} : vector<5x64xbf16> to vector<5x16xbf16>
    %cst_64 = arith.constant dense<0.000000e+00> : vector<5x5xf32>
    %189 = tpu.matmul %187, %188, %cst_64 {dimension_numbers = #tpu.dot_dimension_numbers<[1], [1], [0], [0], [0, 0, 1, 0], [], []>} : vector<5x16xbf16>, vector<5x16xbf16>, vector<5x5xf32> -> vector<5x5xf32>
    %cst_65 = arith.constant 2.500000e-01 : f32
    %190 = vector.broadcast %cst_65 : f32 to vector<5x5xf32>
    %191 = arith.mulf %189, %190 : vector<5x5xf32>
    %cst_66 = arith.constant dense<0xFF800000> : vector<5xf32>
    %192 = vector.multi_reduction <maximumf>, %191, %cst_66 [1] : vector<5x5xf32> to vector<5xf32>
    %193 = vector.shape_cast %192 : vector<5xf32> to vector<5x1xf32>
    %194 = vector.broadcast %193 : vector<5x1xf32> to vector<5x5xf32>
    %195 = arith.subf %191, %194 : vector<5x5xf32>
    %196 = math.exp %195 : vector<5x5xf32>
    %cst_67 = arith.constant dense<0.000000e+00> : vector<5xf32>
    %197 = vector.multi_reduction <add>, %196, %cst_67 [1] : vector<5x5xf32> to vector<5xf32>
    %198 = vector.shape_cast %197 : vector<5xf32> to vector<5x1xf32>
    %199 = tpu.reciprocal %198 {approx = true} : vector<5x1xf32> -> vector<5x1xf32>
    %200 = vector.broadcast %199 : vector<5x1xf32> to vector<5x5xf32>
    %201 = arith.mulf %196, %200 : vector<5x5xf32>
    %202 = arith.truncf %201 : vector<5x5xf32> to vector<5x5xbf16>
    %203 = vector.extract_strided_slice %132 {offsets = [0, 48], sizes = [5, 16], strides = [1, 1]} : vector<5x64xbf16> to vector<5x16xbf16>
    %cst_68 = arith.constant dense<0.000000e+00> : vector<5x16xf32>
    %204 = tpu.matmul %202, %203, %cst_68 {dimension_numbers = #tpu.dot_dimension_numbers<[1], [0], [0], [1], [0, 0, 1, 1], [], []>} : vector<5x5xbf16>, vector<5x16xbf16>, vector<5x16xf32> -> vector<5x16xf32>
    %205 = tpu.concatenate %150, %168, %186, %204 in 1 : vector<5x16xf32>, vector<5x16xf32>, vector<5x16xf32>, vector<5x16xf32> -> vector<5x64xf32>
    %206 = tpu.concatenate %126, %205 in 0 : vector<5x64xf32>, vector<5x64xf32> -> vector<10x64xf32>
    %207 = arith.truncf %206 : vector<10x64xf32> to vector<10x64xbf16>
    %c0_69 = arith.constant 0 : index
    %c0_70 = arith.constant 0 : index
    %c0_71 = arith.constant 0 : index
    %208 = vector.load %arg5[%c0_69, %c0_70, %c0_71] : memref<1x64x64xbf16, #tpu.memory_space<vmem>>, vector<1x64x64xbf16>
    %209 = vector.shape_cast %208 : vector<1x64x64xbf16> to vector<64x64xbf16>
    %cst_72 = arith.constant dense<0.000000e+00> : vector<10x64xf32>
    %210 = tpu.matmul %207, %209, %cst_72 {dimension_numbers = #tpu.dot_dimension_numbers<[1], [0], [0], [1], [0, 0, 1, 1], [], []>} : vector<10x64xbf16>, vector<64x64xbf16>, vector<10x64xf32> -> vector<10x64xf32>
    %211 = arith.addf %19, %210 : vector<10x64xf32>
    %212 = vector.broadcast %12 : vector<1x64xf32> to vector<10x64xf32>
    %213 = arith.addf %211, %212 : vector<10x64xf32>
    %cst_73 = arith.constant dense<0.000000e+00> : vector<10xf32>
    %214 = vector.multi_reduction <add>, %213, %cst_73 [1] : vector<10x64xf32> to vector<10xf32>
    %215 = vector.shape_cast %214 : vector<10xf32> to vector<10x1xf32>
    %cst_74 = arith.constant 6.400000e+01 : f32
    %216 = vector.broadcast %cst_74 : f32 to vector<10x1xf32>
    %217 = arith.divf %215, %216 : vector<10x1xf32>
    %218 = vector.broadcast %217 : vector<10x1xf32> to vector<10x64xf32>
    %219 = arith.subf %213, %218 : vector<10x64xf32>
    %220 = arith.mulf %219, %219 : vector<10x64xf32>
    %cst_75 = arith.constant dense<0.000000e+00> : vector<10xf32>
    %221 = vector.multi_reduction <add>, %220, %cst_75 [1] : vector<10x64xf32> to vector<10xf32>
    %222 = vector.shape_cast %221 : vector<10xf32> to vector<10x1xf32>
    %cst_76 = arith.constant 6.400000e+01 : f32
    %223 = vector.broadcast %cst_76 : f32 to vector<10x1xf32>
    %224 = arith.divf %222, %223 : vector<10x1xf32>
    %225 = vector.broadcast %217 : vector<10x1xf32> to vector<10x64xf32>
    %226 = arith.subf %213, %225 : vector<10x64xf32>
    %cst_77 = arith.constant 9.99999996E-13 : f32
    %227 = vector.broadcast %cst_77 : f32 to vector<10x1xf32>
    %228 = arith.addf %224, %227 : vector<10x1xf32>
    %229 = math.rsqrt %228 : vector<10x1xf32>
    %230 = vector.broadcast %229 : vector<10x1xf32> to vector<10x64xf32>
    %231 = arith.mulf %226, %230 : vector<10x64xf32>
    %232 = vector.broadcast %8 : vector<1x64xf32> to vector<10x64xf32>
    %233 = arith.mulf %231, %232 : vector<10x64xf32>
    %234 = vector.broadcast %10 : vector<1x64xf32> to vector<10x64xf32>
    %235 = arith.addf %233, %234 : vector<10x64xf32>
    %236 = arith.truncf %235 : vector<10x64xf32> to vector<10x64xbf16>
    %c0_78 = arith.constant 0 : index
    %c0_79 = arith.constant 0 : index
    %c0_80 = arith.constant 0 : index
    %237 = vector.load %arg6[%c0_78, %c0_79, %c0_80] : memref<1x64x128xbf16, #tpu.memory_space<vmem>>, vector<1x64x128xbf16>
    %238 = vector.shape_cast %237 : vector<1x64x128xbf16> to vector<64x128xbf16>
    %cst_81 = arith.constant dense<0.000000e+00> : vector<10x128xf32>
    %239 = tpu.matmul %236, %238, %cst_81 {dimension_numbers = #tpu.dot_dimension_numbers<[1], [0], [0], [1], [0, 0, 1, 1], [], []>} : vector<10x64xbf16>, vector<64x128xbf16>, vector<10x128xf32> -> vector<10x128xf32>
    %240 = vector.broadcast %18 : vector<1x128xf32> to vector<10x128xf32>
    %241 = arith.addf %239, %240 : vector<10x128xf32>
    %cst_82 = arith.constant 0.707106769 : f32
    %242 = vector.broadcast %cst_82 : f32 to vector<10x128xf32>
    %243 = arith.mulf %241, %242 : vector<10x128xf32>
    %244 = math.absf %243 : vector<10x128xf32>
    %cst_83 = arith.constant 0.327591091 : f32
    %245 = vector.broadcast %cst_83 : f32 to vector<10x128xf32>
    %246 = arith.mulf %245, %244 : vector<10x128xf32>
    %cst_84 = arith.constant 1.000000e+00 : f32
    %247 = vector.broadcast %cst_84 : f32 to vector<10x128xf32>
    %248 = arith.addf %247, %246 : vector<10x128xf32>
    %cst_85 = arith.constant 1.000000e+00 : f32
    %249 = vector.broadcast %cst_85 : f32 to vector<10x128xf32>
    %250 = arith.divf %249, %248 : vector<10x128xf32>
    %cst_86 = arith.constant 1.06140542 : f32
    %251 = vector.broadcast %cst_86 : f32 to vector<10x128xf32>
    %252 = arith.mulf %250, %251 : vector<10x128xf32>
    %cst_87 = arith.constant -1.45315206 : f32
    %253 = vector.broadcast %cst_87 : f32 to vector<10x128xf32>
    %254 = arith.addf %253, %252 : vector<10x128xf32>
    %255 = arith.mulf %250, %254 : vector<10x128xf32>
    %cst_88 = arith.constant 1.42141378 : f32
    %256 = vector.broadcast %cst_88 : f32 to vector<10x128xf32>
    %257 = arith.addf %256, %255 : vector<10x128xf32>
    %258 = arith.mulf %250, %257 : vector<10x128xf32>
    %cst_89 = arith.constant -0.284496725 : f32
    %259 = vector.broadcast %cst_89 : f32 to vector<10x128xf32>
    %260 = arith.addf %259, %258 : vector<10x128xf32>
    %261 = arith.mulf %250, %260 : vector<10x128xf32>
    %cst_90 = arith.constant 0.254829586 : f32
    %262 = vector.broadcast %cst_90 : f32 to vector<10x128xf32>
    %263 = arith.addf %262, %261 : vector<10x128xf32>
    %264 = arith.mulf %250, %263 : vector<10x128xf32>
    %cst_91 = arith.constant 0.000000e+00 : f32
    %265 = vector.broadcast %cst_91 : f32 to vector<10x128xf32>
    %266 = arith.subf %265, %244 : vector<10x128xf32>
    %267 = arith.mulf %266, %244 : vector<10x128xf32>
    %268 = math.exp %267 : vector<10x128xf32>
    %269 = arith.mulf %264, %268 : vector<10x128xf32>
    %cst_92 = arith.constant 1.000000e+00 : f32
    %270 = vector.broadcast %cst_92 : f32 to vector<10x128xf32>
    %271 = arith.subf %270, %269 : vector<10x128xf32>
    %cst_93 = arith.constant 0.000000e+00 : f32
    %272 = vector.broadcast %cst_93 : f32 to vector<10x128xf32>
    %273 = arith.cmpf oge, %243, %272 : vector<10x128xf32>
    %cst_94 = arith.constant 0.000000e+00 : f32
    %274 = vector.broadcast %cst_94 : f32 to vector<10x128xf32>
    %275 = arith.subf %274, %271 : vector<10x128xf32>
    %276 = arith.select %273, %271, %275 : vector<10x128xi1>, vector<10x128xf32>
    %cst_95 = arith.constant 5.000000e-01 : f32
    %277 = vector.broadcast %cst_95 : f32 to vector<10x128xf32>
    %278 = arith.mulf %277, %241 : vector<10x128xf32>
    %cst_96 = arith.constant 1.000000e+00 : f32
    %279 = vector.broadcast %cst_96 : f32 to vector<10x128xf32>
    %280 = arith.addf %279, %276 : vector<10x128xf32>
    %281 = arith.mulf %278, %280 : vector<10x128xf32>
    %282 = arith.truncf %281 : vector<10x128xf32> to vector<10x128xbf16>
    %c0_97 = arith.constant 0 : index
    %c0_98 = arith.constant 0 : index
    %c0_99 = arith.constant 0 : index
    %283 = vector.load %arg7[%c0_97, %c0_98, %c0_99] : memref<1x128x64xbf16, #tpu.memory_space<vmem>>, vector<1x128x64xbf16>
    %284 = vector.shape_cast %283 : vector<1x128x64xbf16> to vector<128x64xbf16>
    %cst_100 = arith.constant dense<0.000000e+00> : vector<10x64xf32>
    %285 = tpu.matmul %282, %284, %cst_100 {dimension_numbers = #tpu.dot_dimension_numbers<[1], [0], [0], [1], [0, 0, 1, 1], [], []>} : vector<10x128xbf16>, vector<128x64xbf16>, vector<10x64xf32> -> vector<10x64xf32>
    %286 = arith.addf %213, %285 : vector<10x64xf32>
    %287 = vector.broadcast %14 : vector<1x64xf32> to vector<10x64xf32>
    %288 = arith.addf %286, %287 : vector<10x64xf32>
    %c0_101 = arith.constant 0 : index
    %c0_102 = arith.constant 0 : index
    %289 = vector.load %arg12[%c0_101, %c0_102] : memref<10x64xf32, #tpu.memory_space<vmem>>, vector<10x64xf32>
    tpu.vector_store %arg12[%c0_101, %c0_102], %288 {strides = array<i32>} : memref<10x64xf32, #tpu.memory_space<vmem>>, vector<10x64xf32>,
    %c1_i32 = arith.constant 1 : i32
    %290 = arith.cmpi eq, %arg0, %c1_i32 : i32
    %291 = arith.extui %290 : i1 to i32
    %c0_i32_103 = arith.constant 0 : i32
    %292 = arith.cmpi ne, %291, %c0_i32_103 : i32
    scf.if %292 {
      %293 = vector.extract_strided_slice %288 {offsets = [0, 0], sizes = [1, 64], strides = [1, 1]} : vector<10x64xf32> to vector<1x64xf32>
      %294 = vector.extract_strided_slice %288 {offsets = [5, 0], sizes = [1, 64], strides = [1, 1]} : vector<10x64xf32> to vector<1x64xf32>
      %295 = tpu.concatenate %293, %294 in 0 : vector<1x64xf32>, vector<1x64xf32> -> vector<2x64xf32>
      %c7 = arith.constant 7 : index
      %c0_104 = arith.constant 0 : index
      %296 = vector.load %arg3[%c7, %c0_104] : memref<9x64xf32, #tpu.memory_space<vmem>>, vector<1x64xf32>
      %c8 = arith.constant 8 : index
      %c0_105 = arith.constant 0 : index
      %297 = vector.load %arg3[%c8, %c0_105] : memref<9x64xf32, #tpu.memory_space<vmem>>, vector<1x64xf32>
      %cst_106 = arith.constant dense<0.000000e+00> : vector<2xf32>
      %298 = vector.multi_reduction <add>, %295, %cst_106 [1] : vector<2x64xf32> to vector<2xf32>
      %299 = vector.shape_cast %298 : vector<2xf32> to vector<2x1xf32>
      %cst_107 = arith.constant 6.400000e+01 : f32
      %300 = vector.broadcast %cst_107 : f32 to vector<2x1xf32>
      %301 = arith.divf %299, %300 : vector<2x1xf32>
      %302 = vector.broadcast %301 : vector<2x1xf32> to vector<2x64xf32>
      %303 = arith.subf %295, %302 : vector<2x64xf32>
      %304 = arith.mulf %303, %303 : vector<2x64xf32>
      %cst_108 = arith.constant dense<0.000000e+00> : vector<2xf32>
      %305 = vector.multi_reduction <add>, %304, %cst_108 [1] : vector<2x64xf32> to vector<2xf32>
      %306 = vector.shape_cast %305 : vector<2xf32> to vector<2x1xf32>
      %cst_109 = arith.constant 6.400000e+01 : f32
      %307 = vector.broadcast %cst_109 : f32 to vector<2x1xf32>
      %308 = arith.divf %306, %307 : vector<2x1xf32>
      %309 = vector.broadcast %301 : vector<2x1xf32> to vector<2x64xf32>
      %310 = arith.subf %295, %309 : vector<2x64xf32>
      %cst_110 = arith.constant 9.99999996E-13 : f32
      %311 = vector.broadcast %cst_110 : f32 to vector<2x1xf32>
      %312 = arith.addf %308, %311 : vector<2x1xf32>
      %313 = math.rsqrt %312 : vector<2x1xf32>
      %314 = vector.broadcast %313 : vector<2x1xf32> to vector<2x64xf32>
      %315 = arith.mulf %310, %314 : vector<2x64xf32>
      %316 = vector.broadcast %296 : vector<1x64xf32> to vector<2x64xf32>
      %317 = arith.mulf %315, %316 : vector<2x64xf32>
      %318 = vector.broadcast %297 : vector<1x64xf32> to vector<2x64xf32>
      %319 = arith.addf %317, %318 : vector<2x64xf32>
      %c0_111 = arith.constant 0 : index
      %c0_112 = arith.constant 0 : index
      %320 = vector.load %arg10[%c0_111, %c0_112] : memref<65x2xf32, #tpu.memory_space<vmem>>, vector<64x2xf32>
      %cst_113 = arith.constant dense<0.000000e+00> : vector<2x2xf32>
      %321 = tpu.matmul %319, %320, %cst_113 {dimension_numbers = #tpu.dot_dimension_numbers<[1], [0], [0], [1], [0, 0, 1, 1], [], []>} : vector<2x64xf32>, vector<64x2xf32>, vector<2x2xf32> -> vector<2x2xf32>
      %c64 = arith.constant 64 : index
      %c0_114 = arith.constant 0 : index
      %322 = vector.load %arg10[%c64, %c0_114] : memref<65x2xf32, #tpu.memory_space<vmem>>, vector<1x2xf32>
      %323 = vector.broadcast %322 : vector<1x2xf32> to vector<2x2xf32>
      %324 = arith.addf %321, %323 : vector<2x2xf32>
      %c0_115 = arith.constant 0 : index
      %c0_116 = arith.constant 0 : index
      %325 = vector.load %arg11[%c0_115, %c0_116] : memref<2x2xf32, #tpu.memory_space<vmem>>, vector<2x2xf32>
      tpu.vector_store %arg11[%c0_115, %c0_116], %324 {strides = array<i32>} : memref<2x2xf32, #tpu.memory_space<vmem>>, vector<2x2xf32>,
    } else {
    }
    return
  }
  func.func @transform_0(%arg0: i32) -> (i32, i32) {
    %c0_i32 = arith.constant 0 : i32
    %c0_i32_0 = arith.constant 0 : i32
    %c0_i32_1 = arith.constant 0 : i32
    return %c0_i32, %c0_i32_0 : i32, i32
  }
  func.func @transform_1(%arg0: i32) -> (i32, i32) {
    %c0_i32 = arith.constant 0 : i32
    %c0_i32_0 = arith.constant 0 : i32
    %c0_i32_1 = arith.constant 0 : i32
    return %c0_i32, %c0_i32_0 : i32, i32
  }
  func.func @transform_2(%arg0: i32) -> (i32, i32) {
    %c0_i32 = arith.constant 0 : i32
    %c0_i32_0 = arith.constant 0 : i32
    %c0_i32_1 = arith.constant 0 : i32
    return %c0_i32, %c0_i32_0 : i32, i32
  }
  func.func @transform_3(%arg0: i32) -> (i32, i32, i32) {
    %c0_i32 = arith.constant 0 : i32
    %c0_i32_0 = arith.constant 0 : i32
    %c0_i32_1 = arith.constant 0 : i32
    return %arg0, %c0_i32, %c0_i32_0 : i32, i32, i32
  }
  func.func @transform_4(%arg0: i32) -> (i32, i32, i32) {
    %c0_i32 = arith.constant 0 : i32
    %c0_i32_0 = arith.constant 0 : i32
    %c0_i32_1 = arith.constant 0 : i32
    return %arg0, %c0_i32, %c0_i32_0 : i32, i32, i32
  }
  func.func @transform_5(%arg0: i32) -> (i32, i32, i32) {
    %c0_i32 = arith.constant 0 : i32
    %c0_i32_0 = arith.constant 0 : i32
    %c0_i32_1 = arith.constant 0 : i32
    return %arg0, %c0_i32, %c0_i32_0 : i32, i32, i32
  }
  func.func @transform_6(%arg0: i32) -> (i32, i32, i32) {
    %c0_i32 = arith.constant 0 : i32
    %c0_i32_0 = arith.constant 0 : i32
    %c0_i32_1 = arith.constant 0 : i32
    return %arg0, %c0_i32, %c0_i32_0 : i32, i32, i32
  }
  func.func @transform_7(%arg0: i32) -> (i32, i32, i32) {
    %c0_i32 = arith.constant 0 : i32
    %c0_i32_0 = arith.constant 0 : i32
    %c0_i32_1 = arith.constant 0 : i32
    return %arg0, %c0_i32, %c0_i32_0 : i32, i32, i32
  }
  func.func @transform_8(%arg0: i32) -> (i32, i32, i32) {
    %c0_i32 = arith.constant 0 : i32
    %c0_i32_0 = arith.constant 0 : i32
    %c0_i32_1 = arith.constant 0 : i32
    return %arg0, %c0_i32, %c0_i32_0 : i32, i32, i32
  }
  func.func @transform_9(%arg0: i32) -> (i32, i32) {
    %c0_i32 = arith.constant 0 : i32
    %c0_i32_0 = arith.constant 0 : i32
    %c0_i32_1 = arith.constant 0 : i32
    return %c0_i32, %c0_i32_0 : i32, i32
  }
  func.func @transform_10(%arg0: i32) -> (i32, i32) {
    %c0_i32 = arith.constant 0 : i32
    %c0_i32_0 = arith.constant 0 : i32
    %c0_i32_1 = arith.constant 0 : i32
    return %c0_i32, %c0_i32_0 : i32, i32
  }
}

</mosaic_0001>

<bundles_post_ra>
// kernel: vit_forward.1
= control target key start
LH: loop header
LB: loop body
LE: loop exit
PB: predicated region body
PF: predicated region fallthrough
CT: control target
= control target key end

     0   :  { %s3241_s0 = inlined_call_operand.vmem [shape: bf16[8,768], index: 0, kind: input, shape index: {}]   ;;  %s3242_s1 = inlined_call_operand.vmem [shape: bf16[768,64], index: 1, kind: input, shape index: {}]   ;;  %s3243_s2 = inlined_call_operand.vmem [shape: f32[9,64], index: 2, kind: input, shape index: {}]   ;;  %s3244_s3 = inlined_call_operand.vmem [shape: bf16[2,64,192], index: 3, kind: input, shape index: {}]   ;;  %s3245_s4 = inlined_call_operand.vmem [shape: bf16[2,64,64], index: 4, kind: input, shape index: {}]   ;;  %s3246_s5 = inlined_call_operand.vmem [shape: bf16[2,64,128], index: 5, kind: input, shape index: {}]   ;;  %s3247_s6 = inlined_call_operand.vmem [shape: bf16[2,128,64], index: 6, kind: input, shape index: {}]   ;;  %s3248_s7 = inlined_call_operand.vmem [shape: f32[2,6,64], index: 7, kind: input, shape index: {}]   ;;  %s3249_s8 = inlined_call_operand.vmem [shape: f32[2,2,192], index: 8, kind: input, shape index: {}]   ;;  %s3250_s9 = inlined_call_operand.vmem [shape: f32[65,2], index: 9, kind: input, shape index: {}]   ;;  %s3251_s10 = inlined_call_operand.hbm [shape: f32[2,2], index: 10, kind: output, shape index: {}]  }
   0x1   :  { %3252 = sst [smem:[#allocation6_spill]] %s3244_s3 }
   0x2   :  { %15 = vsyncpa [#allocation4], 0  ;;  %s2759_s13 = smov 0  }
   0x3 LB: > { %s2765_s14 = sadd.s32 4294967295, %s2692_s13   ;;  %p2148_p0 = scmp.ge.s32.totalorder %s2692_s13, 1  ;;  %s2692_s13 = sphi %s2759_s13, %s21_s13  }
   0x4   : > { %p357_p1 = scmp.lt.s32.totalorder %s2692_s13, 3 }
   0x6   : > { %p358_p2 = pnand %p2148_p0, %p357_p1 }
   0x7   : > { %p414_p3 = scmp.lt.s32.totalorder (!%p358_p2), %s2765_s14, 1  ;;  %s3253_s3 = sld [smem:[#allocation6_spill]] (!%p358_p2) }
   0x8   : > { %361 = sbr.rel (%p358_p2) target bundleno = 2653 (0xa5d), region = 60  ;;  %p2160_p4 = scmp.ne.s32.totalorder (!%p358_p2), %s2765_s14, 0 }
   0xd   : > { %s415_s15 = scalar_select %p414_p3, %s2765_s14, 1 }
   0xf   : > { %s2475_s16 = sshll.u32 %s415_s15, 6  ;;  %s2476_s17 = sshll.u32 %s415_s15, 5 }
  0x10   : > { %s2774_s20 = scalar_lea.vmem %s3253_s3, %s2475_s16  ;;  %s2779_s23 = scalar_lea.vmem %s3245_s4, %s2476_s17 }
  0x11   : > { %s2784_s26 = scalar_lea.vmem %s3246_s5, %s2476_s17  ;;  %s2789_s29 = scalar_lea.vmem %s3247_s6, %s2475_s16 }
  0x12   : > { %s2157_s30 = sshll.u32 %s415_s15, 3  ;;  %s2479_s11 = sshll.u32 %s415_s15, 2 }
  0x13   : > { %s2794_s19 = scalar_lea.vmem %s3248_s7, %s2157_s30  ;;  %s2799_s3 = scalar_lea.vmem %s3249_s8, %s2479_s11 }
  0x14   : > { %447 = sbr.rel (%p2160_p4) target bundleno = 227 (0xe3), region = 64 }
  0x19   : > { %v2487_v0 = vld [vmem:[%s3242_s1 + $0x38] sm:$0xff]  ;;  %v2486_v2 = vld [vmem:[%s3242_s1 + $0x30] sm:$0xff]  ;;  %v2485_v8 = vld [vmem:[%s3242_s1 + $0x28] sm:$0xff]  ;;  %vm955_vm0 = vcmask 1040384   ;;  %vm963_vm1 = vcmask 517120   ;;  %vm957_vm2 = vcmask 1044480  }
  0x1a   : > { %v2495_v1 = vld [vmem:[%s3242_s1 + $0x78] sm:$0xff]  ;;  %856 = vmatpush.bf16.msra.mxu0 %v2487_v0  ;;  %v2494_v3 = vld [vmem:[%s3242_s1 + $0x70] sm:$0xff]  ;;  %v2493_v9 = vld [vmem:[%s3242_s1 + $0x68] sm:$0xff]  ;;  %vm959_vm3 = vcmask 1045504   ;;  %vm961_vm4 = vcmask 523264  }
  0x1b   : > { %869 = vmatpush.bf16.msra.mxu1 %v2495_v1  ;;  %v2503_v4 = vld [vmem:[%s3242_s1 + $0xb8] sm:$0xff]  ;;  %v2502_v6 = vld [vmem:[%s3242_s1 + $0xb0] sm:$0xff]  ;;  %v2501_v10 = vld [vmem:[%s3242_s1 + $0xa8] sm:$0xff] }
  0x1c   : > { %v2511_v5 = vld [vmem:[%s3242_s1 + $0xf8] sm:$0xff]  ;;  %882 = vmatpush.bf16.msra.mxu2 %v2503_v4  ;;  %v2510_v7 = vld [vmem:[%s3242_s1 + $0xf0] sm:$0xff]  ;;  %v2509_v11 = vld [vmem:[%s3242_s1 + $0xe8] sm:$0xff] }
  0x1d   : > { %895 = vmatpush.bf16.msra.mxu3 %v2511_v5  ;;  %v2484_v12 = vld [vmem:[%s3242_s1 + $0x20] sm:$0xff]  ;;  %v2483_v16 = vld [vmem:[%s3242_s1 + $0x18] sm:$0xff]  ;;  %v2482_v20 = vld [vmem:[%s3242_s1 + $0x10] sm:$0xff] }
  0x1e   : > { %857 = vmatpush.bf16.msra.mxu0 %v2486_v2  ;;  %v2492_v13 = vld [vmem:[%s3242_s1 + $0x60] sm:$0xff]  ;;  %v2491_v17 = vld [vmem:[%s3242_s1 + $0x58] sm:$0xff]  ;;  %v2490_v21 = vld [vmem:[%s3242_s1 + $0x50] sm:$0xff] }
  0x1f   : > { %870 = vmatpush.bf16.msra.mxu1 %v2494_v3  ;;  %v2500_v14 = vld [vmem:[%s3242_s1 + $0xa0] sm:$0xff]  ;;  %v2499_v18 = vld [vmem:[%s3242_s1 + $0x98] sm:$0xff]  ;;  %v2498_v22 = vld [vmem:[%s3242_s1 + $0x90] sm:$0xff] }
  0x20   : > { %883 = vmatpush.bf16.msra.mxu2 %v2502_v6  ;;  %v2508_v15 = vld [vmem:[%s3242_s1 + $0xe0] sm:$0xff]  ;;  %v2507_v19 = vld [vmem:[%s3242_s1 + $0xd8] sm:$0xff]  ;;  %v2506_v23 = vld [vmem:[%s3242_s1 + $0xd0] sm:$0xff] }
  0x21   : > { %896 = vmatpush.bf16.msra.mxu3 %v2510_v7  ;;  %v2481_v24 = vld [vmem:[%s3242_s1 + $0x8] sm:$0xff]  ;;  %v448_v26 = vld [vmem:[%s3241_s0] sm:$0xff]  ;;  %v2519_v34 = vld [vmem:[%s3242_s1 + $0x138] sm:$0xff] }
  0x22   : > { %858 = vmatpush.bf16.msra.mxu0 %v2485_v8  ;;  %v2489_v25 = vld [vmem:[%s3242_s1 + $0x48] sm:$0xff]  ;;  %v550_v29 = vunpack.c.l.b16 %v448_v26  ;;  %v551_v30 = vunpack.c.h.b16 %v448_v26  ;;  %v2480_v32 = vld [vmem:[%s3242_s1] sm:$0xff]  ;;  %v2527_v35 = vld [vmem:[%s3242_s1 + $0x178] sm:$0xff] }
  0x23   : > { %871 = vmatpush.bf16.msra.mxu1 %v2493_v9  ;;  %v2497_v27 = vld [vmem:[%s3242_s1 + $0x88] sm:$0xff]  ;;  %v2488_v33 = vld [vmem:[%s3242_s1 + $0x40] sm:$0xff]  ;;  %v2518_v42 = vld [vmem:[%s3242_s1 + $0x130] sm:$0xff] }
  0x24   : > { %884 = vmatpush.bf16.msra.mxu2 %v2501_v10  ;;  %v2505_v28 = vld [vmem:[%s3242_s1 + $0xc8] sm:$0xff]  ;;  %v2496_v36 = vld [vmem:[%s3242_s1 + $0x80] sm:$0xff]  ;;  %v556_v40 = vpack.c.b16 %v550_v29, %v550_v29  ;;  %v557_v41 = vpack.c.b16 %v551_v30, %v551_v30  ;;  %v2526_v43 = vld [vmem:[%s3242_s1 + $0x170] sm:$0xff] }
  0x25   : > { %897 = vmatpush.bf16.msra.mxu3 %v2509_v11  ;;  %v449_v31 = vld [vmem:[%s3241_s0 + $0x8] sm:$0xff]  ;;  %v2504_v37 = vld [vmem:[%s3242_s1 + $0xc0] sm:$0xff]  ;;  %v2515_v50 = vld [vmem:[%s3242_s1 + $0x118] sm:$0xff] }
  0x26   : > { %859 = vmatpush.bf16.msra.mxu0 %v2484_v12  ;;  %v552_v38 = vunpack.c.l.b16 %v449_v31  ;;  %v553_v39 = vunpack.c.h.b16 %v449_v31  ;;  %v2517_v46 = vld [vmem:[%s3242_s1 + $0x128] sm:$0xff]  ;;  %v2516_v48 = vld [vmem:[%s3242_s1 + $0x120] sm:$0xff]  ;;  %v2523_v51 = vld [vmem:[%s3242_s1 + $0x158] sm:$0xff] }
  0x27   : > { %872 = vmatpush.bf16.msra.mxu1 %v2492_v13  ;;  %v2525_v47 = vld [vmem:[%s3242_s1 + $0x168] sm:$0xff]  ;;  %v2524_v49 = vld [vmem:[%s3242_s1 + $0x160] sm:$0xff]  ;;  %v2514_v52 = vld [vmem:[%s3242_s1 + $0x110] sm:$0xff] }
  0x28   : > { %885 = vmatpush.bf16.msra.mxu2 %v2500_v14  ;;  %v558_v44 = vpack.c.b16 %v552_v38, %v552_v38  ;;  %v559_v45 = vpack.c.b16 %v553_v39, %v553_v39  ;;  %v2522_v53 = vld [vmem:[%s3242_s1 + $0x150] sm:$0xff]  ;;  %v2513_v54 = vld [vmem:[%s3242_s1 + $0x108] sm:$0xff]  ;;  %v2512_v59 = vld [vmem:[%s3242_s1 + $0x100] sm:$0xff] }
  0x29   : > { %898 = vmatpush.bf16.msra.mxu3 %v2508_v15  ;;  %v2521_v55 = vld [vmem:[%s3242_s1 + $0x148] sm:$0xff]  ;;  %v450_v56 = vld [vmem:[%s3241_s0 + $0x10] sm:$0xff]  ;;  %v2520_v60 = vld [vmem:[%s3242_s1 + $0x140] sm:$0xff] }
  0x2a   : > { %860 = vmatpush.bf16.msra.mxu0 %v2483_v16  ;;  %v554_v57 = vunpack.c.l.b16 %v450_v56  ;;  %v555_v58 = vunpack.c.h.b16 %v450_v56  ;;  %v2576_v8 = vld [vmem:[%s3243_s2] ss:$0 sm:$0xff]  ;;  %v938_v9 = vld [vmem:[%s3243_s2 + $0x3] sm:$0xf]  ;;  %v934_v13 = vld [vmem:[%s3243_s2 + $0x1] sm:$0x1] }
  0x2b   : > { %873 = vmatpush.bf16.msra.mxu1 %v2491_v17  ;;  %v940_v11 = vadd.f32 %v2576_v8, %v938_v9  ;;  %v935_v14 = vld [vmem:[%s3243_s2 + $0x2] sm:$0x1] }
  0x2c   : > { %886 = vmatpush.bf16.msra.mxu2 %v2499_v18  ;;  %v560_v61 = vpack.c.b16 %v554_v57, %v554_v57  ;;  %v561_v62 = vpack.c.b16 %v555_v58, %v555_v58 }
  0x2d   : > { %899 = vmatpush.bf16.msra.mxu3 %v2507_v19  ;;  %v943_v18 = vrot.slane %v940_v11, 4  ;;  %v936_v19 = vadd.f32 %v935_v14, %v934_v13 }
  0x2e   : > { %861 = vmatpush.bf16.msra.mxu0 %v2482_v20 }
  0x2f   : > { %874 = vmatpush.bf16.msra.mxu1 %v2490_v21 }
  0x30   : > { %887 = vmatpush.bf16.msra.mxu2 %v2498_v22 }
  0x31   : > { %900 = vmatpush.bf16.msra.mxu3 %v2506_v23  ;;  %v950_v23 = vrot.slane %v936_v19, 3 }
  0x32   : > { %862 = vmatpush.bf16.msra.mxu0 %v2481_v24 }
  0x33   : > { %875 = vmatpush.bf16.msra.mxu1 %v2489_v25 }
  0x34   : > { %888 = vmatpush.bf16.msra.mxu2 %v2497_v27 }
  0x35   : > { %901 = vmatpush.bf16.msra.mxu3 %v2505_v28 }
  0x36   : > { %863 = vmatpush.bf16.msra.mxu0 %v2480_v32 }
  0x37   : > { %876 = vmatpush.bf16.msra.mxu1 %v2488_v33 }
  0x38   : > { %889 = vmatpush.bf16.msra.mxu2 %v2496_v36 }
  0x39   : > { %902 = vmatpush.bf16.msra.mxu3 %v2504_v37  ;;  %864 = vmatmul.bf16.vlgmr.msra.gmra.mxu0 %v556_v40 }
  0x3a   : > { %908 = vmatpush.bf16.msrb.mxu0 %v2519_v34  ;;  %877 = vmatmul.bf16.vlgmr.msra.gmra.mxu1 %v557_v41 }
  0x3b   : > { %921 = vmatpush.bf16.msrb.mxu1 %v2527_v35  ;;  %890 = vmatmul.bf16.vlgmr.msra.gmra.mxu2 %v558_v44 }
  0x3c   : > { %903 = vmatmul.bf16.vlgmr.msra.gmra.mxu3 %v559_v45 }
  0x3e   : > { %909 = vmatpush.bf16.msrb.mxu0 %v2518_v42 }
  0x3f   : > { %922 = vmatpush.bf16.msrb.mxu1 %v2526_v43 }
  0x42   : > { %910 = vmatpush.bf16.msrb.mxu0 %v2517_v46 }
  0x43   : > { %923 = vmatpush.bf16.msrb.mxu1 %v2525_v47 }
  0x46   : > { %911 = vmatpush.bf16.msrb.mxu0 %v2516_v48 }
  0x47   : > { %924 = vmatpush.bf16.msrb.mxu1 %v2524_v49 }
  0x4a   : > { %912 = vmatpush.bf16.msrb.mxu0 %v2515_v50 }
  0x4b   : > { %925 = vmatpush.bf16.msrb.mxu1 %v2523_v51 }
  0x4e   : > { %913 = vmatpush.bf16.msrb.mxu0 %v2514_v52 }
  0x4f   : > { %926 = vmatpush.bf16.msrb.mxu1 %v2522_v53 }
  0x52   : > { %914 = vmatpush.bf16.msrb.mxu0 %v2513_v54 }
  0x53   : > { %927 = vmatpush.bf16.msrb.mxu1 %v2521_v55 }
  0x56   : > { %915 = vmatpush.bf16.msrb.mxu0 %v2512_v59 }
  0x57   : > { %928 = vmatpush.bf16.msrb.mxu1 %v2520_v60 }
  0x59   : > { %916 = vmatmul.bf16.vlgmr.msrb.gmra.mxu0 %v560_v61 }
  0x5a   : > { %929 = vmatmul.bf16.vlgmr.msrb.gmra.mxu1 %v561_v62 }
  0xb6   : > { %v865_v63 = vpop.f32.mrf.mxu0 }
  0xb7   : > { %v878_v0 = vpop.f32.mrf.mxu1 }
  0xb8   : > { %v879_v7 = vadd.f32 %v878_v0, %v865_v63 }
  0xbe   : > { %v867_v1 = vpop.f32.mrf.mxu0  ;;  %v891_v3 = vpop.f32.mrf.mxu2 }
  0xbf   : > { %v880_v2 = vpop.f32.mrf.mxu1  ;;  %v904_v4 = vpop.f32.mrf.mxu3  ;;  %v892_v10 = vadd.f32 %v891_v3, %v879_v7 }
  0xc1   : > { %v905_v12 = vadd.f32 %v904_v4, %v892_v10 }
  0xc6   : > { %v893_v5 = vpop.f32.mrf.mxu2 }
  0xc7   : > { %v906_v6 = vpop.f32.mrf.mxu3 }
  0xd6   : > { %v917_v15 = vpop.f32.mrf.mxu0 }
  0xd7   : > { %v930_v16 = vpop.f32.mrf.mxu1  ;;  %v918_v17 = vadd.f32 %v917_v15, %v905_v12 }
  0xd9   : > { %v931_v20 = vadd.f32 %v930_v16, %v918_v17 }
  0xdb   : > { %v941_v21 = vadd.f32 %v940_v11, %v931_v20  ;;  %v945_v22 = vadd.f32 %v943_v18, %v931_v20 }
  0xdd   : > { %v947_v24 = vrot.slane %v941_v21, 7  ;;  %v953_v25 = vrot.slane %v945_v22, 6 }
  0xde   : > { %v919_v26 = vpop.f32.mrf.mxu0 }
  0xdf   : > { %v932_v27 = vpop.f32.mrf.mxu1  ;;  %v956_v28 = vsel %vm955_vm0, %v936_v19, %v947_v24  ;;  %964 = vst.msk [vmem:[#allocation2 + $0x8] sm:$0x3] %vm963_vm1, %v953_v25 }
  0xe0   : > { %v958_v29 = vsel %vm957_vm2, %v956_v28, %v950_v23 }
  0xe1   : > { %v960_v30 = vsel %vm959_vm3, %v958_v29, %v953_v25 }
  0xe2   : > { %962 = vst.msk [vmem:[#allocation2] sm:$0xff] %vm961_vm4, %v960_v30 }
  0xe3 PF: > { %vm975_vm5 = vcmask 523264   ;;  %vm979_vm6 = vcmask 517120   ;;  %v2694_v35 = vmov 64.0   ;;  %v2379_v52 = vld [vmem:[%s2774_s20 + $0x30] sm:$0xf]  ;;  %s2696_s28 = smov 112  }
  0xe4   : > { %2599 = vrcp.f32 %v2694_v35  ;;  %v2535_v53 = vld [vmem:[%s2774_s20 + $0x34] sm:$0xf0]  ;;  %v2534_v54 = vld [vmem:[%s2774_s20 + $0x34] sm:$0xf]  ;;  %v2381_v56 = vld [vmem:[%s2774_s20 + $0x38] sm:$0xf0] }
  0xe5   : > { %v2380_v55 = vor.u32 %v2535_v53, %v2379_v52  ;;  %v2384_v57 = vor.u32 %v2534_v54, %v2381_v56  ;;  %v2371_v58 = vld [vmem:[%s2774_s20 + $0x20] sm:$0xf]  ;;  %v2533_v59 = vld [vmem:[%s2774_s20 + $0x24] sm:$0xf0]  ;;  %v2532_v60 = vld [vmem:[%s2774_s20 + $0x24] sm:$0xf] }
  0xe6   : > { %v2971_v33 = vld [vmem:[#allocation2 + $0x8] sm:$0x3]  ;;  %v2372_v61 = vor.u32 %v2533_v59, %v2371_v58  ;;  %v2373_v62 = vld [vmem:[%s2774_s20 + $0x28] sm:$0xf0]  ;;  %v2363_v0 = vld [vmem:[%s2774_s20 + $0x10] sm:$0xf] }
  0xe7   : > { %v980_v34 = vsel %vm979_vm6, %v2971_v33, 0.0  ;;  %1095 = vmatpush.bf16.msra.mxu0 %v2380_v55  ;;  %1109 = vmatpush.bf16.msra.mxu1 %v2384_v57  ;;  %v2376_v63 = vor.u32 %v2532_v60, %v2373_v62  ;;  %v2531_v1 = vld [vmem:[%s2774_s20 + $0x14] sm:$0xf0]  ;;  %v2530_v2 = vld [vmem:[%s2774_s20 + $0x14] sm:$0xf]  ;;  %s2697_s30 = smov 64  }
  0xe8   : > { %v2364_v3 = vor.u32 %v2531_v1, %v2363_v0  ;;  %v2365_v4 = vld [vmem:[%s2774_s20 + $0x18] sm:$0xf0]  ;;  %v2355_v6 = vld [vmem:[%s2774_s20] sm:$0xf]  ;;  %v2529_v7 = vld [vmem:[%s2774_s20 + $0x4] sm:$0xf0] }
  0xe9   : > { %v2967_v31 = vld [vmem:[#allocation2] sm:$0xff]  ;;  %v2368_v5 = vor.u32 %v2530_v2, %v2365_v4  ;;  %v2356_v10 = vor.u32 %v2529_v7, %v2355_v6  ;;  %v2357_v11 = vld [vmem:[%s2774_s20 + $0x8] sm:$0xf0]  ;;  %s2698_s11 = smov 96   ;;  %s2699_s12 = smov 48   ;;  %vm1164_vm14 = vcmask 1041408  }
  0xea   : > { %v976_v32 = vsel %vm975_vm5, %v2967_v31, 0.0  ;;  %v2600_v36 = vpop.eup %2599  ;;  %v2528_v8 = vld [vmem:[%s2774_s20 + $0x4] sm:$0xf]  ;;  %s2695_s20 = smov 16   ;;  %s2700_s18 = smov 80   ;;  %vm1165_vm15 = vcmask 1042432  }
  0xeb   : > { %977 = vadd.xlane.f32.xlu0 %v976_v32  ;;  %v984_v37 = vmul.f32 64.0, %v2600_v36  ;;  %vm988_vm7 = vweird.f32 %v2600_v36  ;;  %1096 = vmatpush.bf16.msra.mxu0 %v2372_v61  ;;  %v2360_v13 = vor.u32 %v2528_v8, %v2357_v11  ;;  %v2592_v32 = vld [vmem:[%s2794_s19] ss:$0 sm:$0xff]  ;;  %s2701_s21 = smov 32   ;;  %v2702_v7 = vmov 65535   ;;  %p2469_p5 = scmp.ne.s32.totalorder %s2765_s14, 1 }
  0xec   : > { %1110 = vmatpush.bf16.msra.mxu1 %v2376_v63  ;;  %v1166_v8 = vsel %vm1164_vm14, 4294967295, %v2702_v7  ;;  %vm1126_vm0 = vcmask 130048   ;;  %vm1147_vm1 = vcmask 36864   ;;  %vm1160_vm2 = vcmask 39936  }
  0xed   : > { %v985_v38 = vsub.f32 1.0, %v984_v37  ;;  %vm1371_vm3 = vcmask 261120   ;;  %vm1373_vm4 = vcmask 392192  }
  0xef   : > { %v986_v39 = vmul.f32 %v2600_v36, %v985_v38  ;;  %1097 = vmatpush.bf16.msra.mxu0 %v2364_v3  ;;  %v2593_v38 = vld [vmem:[%s2794_s19 + $0x1] ss:$0 sm:$0xff] }
  0xf0   : > { %1111 = vmatpush.bf16.msra.mxu1 %v2368_v5 }
  0xf1   : > { %v987_v40 = vadd.f32 %v2600_v36, %v986_v39 }
  0xf3   : > { %981 = vadd.xlane.f32.xlu0 %v980_v34  ;;  %v2975_v41 = vsel %vm988_vm7, %v2600_v36, %v987_v40  ;;  %1098 = vmatpush.bf16.msra.mxu0 %v2356_v10  ;;  %vm1641_vm7 = vcmask 1044480  }
  0xf4   : > { %1112 = vmatpush.bf16.msra.mxu1 %v2360_v13 }
 0x15e   : > { %v978_v42 = vpop.xlane.xlu0 %977 }
 0x15f   : > { %v990_v43 = vmul.f32 %v2975_v41, %v978_v42 }
 0x161   : > { %v2979_v44 = vsub.f32 %v2967_v31, %v990_v43 }
 0x163   : > { %v994_v45 = vmul.f32 %v2979_v44, %v2979_v44 }
 0x165   : > { %v996_v46 = vsel %vm975_vm5, %v994_v45, 0.0  ;;  %v971_v45 = vld [vmem:[%s2799_s3] ss:$2 sm:$0x3] }
 0x166   : > { %997 = vadd.xlane.f32.xlu1 %v996_v46  ;;  %v982_v47 = vpop.xlane.xlu0 %981  ;;  %v1044_v46 = vperm.slane %v971_v45, 0 }
 0x167   : > { %v991_v48 = vmul.f32 %v2975_v41, %v982_v47 }
 0x169   : > { %v2986_v49 = vsub.f32 %v2971_v33, %v991_v48 }
 0x16b   : > { %v995_v50 = vmul.f32 %v2986_v49, %v2986_v49 }
 0x16d   : > { %v999_v51 = vsel %vm979_vm6, %v995_v50, 0.0  ;;  %v1045_v50 = vperm.slane %v971_v45, 1 }
 0x16e   : > { %1000 = vadd.xlane.f32.xlu1 %v999_v51 }
 0x1d9   : > { %v998_v9 = vpop.xlane.xlu1 %997 }
 0x1da   : > { %v1002_v12 = vmul.f32 %v998_v9, %v2975_v41  ;;  %v3033_v9 = vsel %vm1165_vm15, %v1166_v8, 0 }
 0x1dc   : > { %v1004_v14 = vadd.f32 1e-12, %v1002_v12 }
 0x1de   : > { %2601 = vrsqrt.f32 %v1004_v14  ;;  %vm1012_vm9 = vweird.f32 %v1004_v14 }
 0x1e1   : > { %v1001_v15 = vpop.xlane.xlu1 %1000 }
 0x1e2   : > { %v1003_v16 = vmul.f32 %v1001_v15, %v2975_v41 }
 0x1e4   : > { %v2602_v17 = vpop.eup %2601  ;;  %v1005_v18 = vadd.f32 1e-12, %v1003_v16 }
 0x1e5   : > { %v1007_v19 = vmul.f32 %v2602_v17, %v1004_v14  ;;  %vm1013_vm8 = vweird.f32 %v2602_v17 }
 0x1e6   : > { %2603 = vrsqrt.f32 %v1005_v18  ;;  %vm1014_vm10 = vmor %vm1012_vm9, %vm1013_vm8  ;;  %vm1022_vm12 = vweird.f32 %v1005_v18 }
 0x1e7   : > { %v1008_v20 = vmul.f32 %v2602_v17, %v1007_v19 }
 0x1e9   : > { %v1009_v21 = vmul.f32 0.5, %v1008_v20 }
 0x1eb   : > { %v1010_v22 = vsub.f32 1.5, %v1009_v21 }
 0x1ec   : > { %v2604_v23 = vpop.eup %2603 }
 0x1ed   : > { %v1011_v24 = vmul.f32 %v2602_v17, %v1010_v22  ;;  %v1017_v25 = vmul.f32 %v2604_v23, %v1005_v18  ;;  %vm1023_vm11 = vweird.f32 %v2604_v23 }
 0x1ee   : > { %vm1024_vm13 = vmor %vm1022_vm12, %vm1023_vm11 }
 0x1ef   : > { %v1018_v26 = vmul.f32 %v2604_v23, %v1017_v25  ;;  %v1015_v27 = vsel %vm1014_vm10, %v2602_v17, %v1011_v24 }
 0x1f0   : > { %v1026_v30 = vmul.f32 %v1015_v27, %v2979_v44 }
 0x1f1   : > { %v1019_v28 = vmul.f32 0.5, %v1018_v26 }
 0x1f2   : > { %v1029_v37 = vmul.f32 %v2592_v32, %v1026_v30 }
 0x1f3   : > { %v1020_v29 = vsub.f32 1.5, %v1019_v28 }
 0x1f4   : > { %v1032_v40 = vadd.f32 %v2593_v38, %v1029_v37 }
 0x1f5   : > { %v1021_v34 = vmul.f32 %v2604_v23, %v1020_v29 }
 0x1f7   : > { %v1025_v35 = vsel %vm1024_vm13, %v2604_v23, %v1021_v34 }
 0x1f8   : > { %v1027_v36 = vmul.f32 %v1025_v35, %v2986_v49 }
 0x1fa   : > { %v1030_v39 = vmul.f32 %v2592_v32, %v1027_v36 }
 0x1fc   : > { %v1033_v42 = vadd.f32 %v2593_v38, %v1030_v39 }
 0x1fe   : > { %v1034_v43 = vpack.c.bf16 %v1033_v42, %v1032_v40 }
 0x200   : > { %2385 = vmatmul.msk.bf16.vlgmr.msra.gmra.mxu0 %vm975_vm5, %v1034_v43  ;;  %2386 = vmatmul.msk.bf16.vlgmr.msra.gmra.mxu1 %vm975_vm5, %v1034_v43 }
 0x27d   : > { %v1100_v44 = vpop.f32.mrf.mxu0  ;;  %v1114_v47 = vpop.f32.mrf.mxu1 }
 0x27e   : > { %v1101_v48 = vadd.f32 %v1100_v44, %v1044_v46  ;;  %v1115_v53 = vadd.f32 %v1114_v47, %v1045_v50 }
 0x280   : > { %v1119_v51 = vpack.c.bf16 %v1101_v48, %v1101_v48  ;;  %v1120_v56 = vpack.c.bf16 %v1115_v53, %v1115_v53 }
 0x282   : > { %v1122_v52 = vunpack.c.l.b16 %v1119_v51  ;;  %v3018_v61 = vunpack.c.l.b16 %v1120_v56  ;;  %v1169_v12 = vand.u32 %v3033_v9, %v1120_v56 }
 0x284   : > { %v1123_v49 = vpack.c.b16 %v1122_v52, %v1122_v52 }
 0x285   : > { %v1102_v54 = vpop.f32.mrf.mxu0  ;;  %v1116_v55 = vpop.f32.mrf.mxu1 }
 0x286   : > { %v1103_v57 = vadd.f32 %v1102_v54, %v1044_v46  ;;  %v1117_v58 = vadd.f32 %v1116_v55, %v1045_v50  ;;  %1303 = vrot.lane.b32.xlu1 %v1123_v49, %s2695_s20  ;;  %1184 = vrot.lane.b32.xlu0 %v1123_v49, %s2696_s28 }
 0x287   : > { %1124 = vrot.lane.b32.xlu2 %v1123_v49, %s2697_s30 }
 0x288   : > { %v1375_v59 = vpack.c.bf16 %v1103_v57, %v1103_v57  ;;  %v1376_v60 = vpack.c.bf16 %v1117_v58, %v1117_v58 }
 0x28a   : > { %v1378_v62 = vunpack.c.l.b16 %v1375_v59  ;;  %v1423_v63 = vunpack.c.l.b16 %v1376_v60 }
 0x28c   : > { %v1379_v0 = vpack.c.b16 %v1378_v62, %v1122_v52  ;;  %v3021_v1 = vpack.c.b16 %v1423_v63, %v3018_v61 }
 0x28e   : > { %v1381_v2 = vshrl.u32 %v1379_v0, 16  ;;  %v1384_v3 = vshll.u32 %v1379_v0, 16  ;;  %1244 = vrot.lane.b32.xlu0 %v1123_v49, %s2698_s11 }
 0x28f   : > { %1186 = vrot.lane.b32.xlu2 %v1123_v49, %s2699_s12 }
 0x290   : > { %v1383_v4 = vrot.slane %v1381_v2, 2  ;;  %v1386_v5 = vrot.slane %v1384_v3, 3 }
 0x292   : > { %v1387_v6 = vor.u32 %v1386_v5, %v1383_v4 }
 0x294   : > { %1388 = vrot.lane.b32.xlu1 %v1387_v6, %s2697_s30 }
 0x296   : > { %1568 = vrot.lane.b32.xlu0 %v1387_v6, %s2695_s20 }
 0x297   : > { %1301 = vrot.lane.b32.xlu2 %v1123_v49, %s2700_s18 }
 0x29c   : > { %1511 = vrot.lane.b32.xlu1 %v1387_v6, %s2701_s21 }
 0x29e   : > { %1509 = vrot.lane.b32.xlu0 %v1387_v6, %s2698_s11 }
 0x29f   : > { %1246 = vrot.lane.b32.xlu2 %v1123_v49, %s2701_s21 }
 0x2a7   : > { %1454 = vrot.lane.b32.xlu2 %v1387_v6, %s2699_s12 }
 0x2af   : > { %1452 = vrot.lane.b32.xlu2 %v1387_v6, %s2696_s28 }
 0x2b7   : > { %1566 = vrot.lane.b32.xlu2 %v1387_v6, %s2700_s18 }
 0x2e1   : > { %v1125_v10 = vpop.permute.xlu2 %1124 }
 0x2e2   : > { %v1131_v11 = vsel %vm1126_vm0, %v1125_v10, 0 }
 0x2e3   : > { %1140 = vmatpush.bf16.xpose.msra.mxu2 %v1131_v11 }
 0x2e9   : > { %v1187_v13 = vpop.permute.xlu2 %1186 }
 0x2ea   : > { %2387 = vmatmul.msk.bf16.vlgmr.msra.gmra.mxu2 %vm1126_vm0, %v1119_v51  ;;  %v1192_v14 = vsel %vm1126_vm0, %v1187_v13, 0 }
 0x2eb   : > { %1178 = vmatpush.bf16.msrb.mxu2 %v1169_v12  ;;  %1201 = vmatpush.bf16.xpose.msra.mxu3 %v1192_v14 }
 0x2f1   : > { %v1302_v15 = vpop.permute.xlu2 %1301 }
 0x2f8   : > { %v1304_v16 = vpop.permute.xlu1 %1303  ;;  %v1185_v17 = vpop.permute.xlu0 %1184 }
 0x2f9   : > { %v1247_v18 = vpop.permute.xlu2 %1246  ;;  %2389 = vmatmul.msk.bf16.vlgmr.msra.gmra.mxu3 %vm1126_vm0, %v1185_v17  ;;  %v1309_v19 = vsel %vm1126_vm0, %v1304_v16, 0 }
 0x2fa   : > { %v1252_v20 = vsel %vm1126_vm0, %v1247_v18, 0  ;;  %1318 = vmatpush.bf16.xpose.msrb.mxu3 %v1309_v19 }
 0x2fb   : > { %1261 = vmatpush.bf16.xpose.msrb.mxu0 %v1252_v20 }
 0x300   : > { %v1245_v21 = vpop.permute.xlu0 %1244 }
 0x301   : > { %v1455_v22 = vpop.permute.xlu2 %1454 }
 0x302   : > { %v1460_v23 = vsel %vm1126_vm0, %v1455_v22, 0  ;;  %2391 = vmatmul.msk.bf16.vlgmr.msrb.gmra.mxu0 %vm1126_vm0, %v1245_v21 }
 0x303   : > { %1469 = vmatpush.bf16.xpose.msra.mxu3 %v1460_v23 }
 0x306   : > { %v1389_v24 = vpop.permute.xlu1 %1388 }
 0x307   : > { %v1394_v25 = vsel %vm1126_vm0, %v1389_v24, 0  ;;  %v1426_v24 = vshrl.u32 %v3021_v1, 16 }
 0x308   : > { %v1569_v26 = vpop.permute.xlu0 %1568  ;;  %1403 = vmatpush.bf16.xpose.msra.mxu0 %v1394_v25  ;;  %v1429_v25 = vshll.u32 %v3021_v1, 16 }
 0x309   : > { %v1574_v27 = vsel %vm1126_vm0, %v1569_v26, 0  ;;  %2393 = vmatmul.msk.bf16.vlgmr.msrb.gmra.mxu3 %vm1126_vm0, %v1302_v15  ;;  %v1453_v30 = vpop.permute.xlu2 %1452 }
 0x30b   : > { %1583 = vmatpush.bf16.xpose.msrb.mxu3 %v1574_v27  ;;  %v1428_v27 = vrot.slane %v1426_v24, 2 }
 0x30e   : > { %v1512_v28 = vpop.permute.xlu1 %1511 }
 0x30f   : > { %v1517_v29 = vsel %vm1126_vm0, %v1512_v28, 0  ;;  %v1431_v28 = vrot.slane %v1429_v25, 3 }
 0x310   : > { %1526 = vmatpush.bf16.xpose.msrb.mxu0 %v1517_v29  ;;  %v1510_v32 = vpop.permute.xlu0 %1509 }
 0x311   : > { %v1567_v34 = vpop.permute.xlu2 %1566 }
 0x312   : > { %2395 = vmatmul.msk.bf16.vlgmr.msra.gmra.mxu0 %vm1126_vm0, %v1387_v6  ;;  %v1222_v6 = vpack.c.b16 %v3018_v61, %v3018_v61 }
 0x319   : > { %2397 = vmatmul.msk.bf16.vlgmr.msra.gmra.mxu3 %vm1126_vm0, %v1453_v30 }
 0x322   : > { %2399 = vmatmul.msk.bf16.vlgmr.msrb.gmra.mxu0 %vm1126_vm0, %v1510_v32 }
 0x329   : > { %2401 = vmatmul.msk.bf16.vlgmr.msrb.gmra.mxu3 %vm1126_vm0, %v1567_v34 }
 0x36d   : > { %v1142_v35 = vpop.f32.mrf.mxu2 }
 0x36e   : > { %v1146_v36 = vmul.f32 0.25, %v1142_v35  ;;  %v1432_v35 = vor.u32 %v1431_v28, %v1428_v27 }
 0x370   : > { %v1148_v37 = vsel %vm1147_vm1, %v1146_v36, -inf }
 0x371   : > { %1149 = vmax.xlane.f32.xlu2 %v1148_v37 }
 0x375   : > { %v1144_v38 = vpop.f32.mrf.mxu2 }
 0x37c   : > { %v1203_v39 = vpop.f32.mrf.mxu3 }
 0x37d   : > { %v3053_v40 = vmul.f32 0.25, %v1203_v39 }
 0x37f   : > { %v1263_v42 = vpop.f32.mrf.mxu0  ;;  %v1208_v43 = vsel %vm1147_vm1, %v3053_v40, -inf }
 0x380   : > { %v1267_v45 = vmul.f32 0.25, %v1263_v42  ;;  %1209 = vmax.xlane.f32.xlu1 %v1208_v43 }
 0x382   : > { %v1268_v46 = vsel %vm1147_vm1, %v1267_v45, -inf }
 0x383   : > { %1269 = vmax.xlane.f32.xlu2 %v1268_v46 }
 0x384   : > { %v1205_v44 = vpop.f32.mrf.mxu3 }
 0x387   : > { %v1265_v47 = vpop.f32.mrf.mxu0 }
 0x38c   : > { %v1320_v48 = vpop.f32.mrf.mxu3 }
 0x38d   : > { %v3058_v50 = vmul.f32 0.25, %v1320_v48 }
 0x38f   : > { %v1405_v51 = vpop.f32.mrf.mxu0  ;;  %v1325_v52 = vsel %vm1147_vm1, %v3058_v50, -inf }
 0x390   : > { %v3062_v53 = vmul.f32 0.25, %v1405_v51  ;;  %1326 = vmax.xlane.f32.xlu0 %v1325_v52 }
 0x392   : > { %v1410_v49 = vsel %vm1147_vm1, %v3062_v53, -inf }
 0x393   : > { %1411 = vmax.xlane.f32.xlu2 %v1410_v49 }
 0x394   : > { %v1322_v54 = vpop.f32.mrf.mxu3 }
 0x397   : > { %v1407_v55 = vpop.f32.mrf.mxu0 }
 0x39c   : > { %v1471_v56 = vpop.f32.mrf.mxu3 }
 0x39d   : > { %v1475_v57 = vmul.f32 0.25, %v1471_v56 }
 0x39f   : > { %v1528_v58 = vpop.f32.mrf.mxu0  ;;  %v1476_v59 = vsel %vm1147_vm1, %v1475_v57, -inf }
 0x3a0   : > { %v1532_v60 = vmul.f32 0.25, %v1528_v58  ;;  %1477 = vmax.xlane.f32.xlu1 %v1476_v59 }
 0x3a2   : > { %v1533_v62 = vsel %vm1147_vm1, %v1532_v60, -inf }
 0x3a3   : > { %1534 = vmax.xlane.f32.xlu2 %v1533_v62 }
 0x3a4   : > { %v1473_v63 = vpop.f32.mrf.mxu3 }
 0x3a7   : > { %v1530_v0 = vpop.f32.mrf.mxu0 }
 0x3ac   : > { %v1585_v2 = vpop.f32.mrf.mxu3 }
 0x3ad   : > { %v3068_v3 = vmul.f32 0.25, %v1585_v2 }
 0x3af   : > { %v1590_v4 = vsel %vm1147_vm1, %v3068_v3, -inf }
 0x3b0   : > { %1591 = vmax.xlane.f32.xlu1 %v1590_v4 }
 0x3b4   : > { %v1587_v5 = vpop.f32.mrf.mxu3 }
 0x3b5   : > { %v1437_v5 = vand.u32 %v1432_v35, %v3033_v9 }
 0x3c9   : > { %1223 = vrot.lane.b32.xlu1 %v1222_v6, %s2696_s28 }
 0x3e4   : > { %v1150_v7 = vpop.xlane.xlu2 %1149 }
 0x3e5   : > { %v1151_v8 = vsub.f32 %v1146_v36, %v1150_v7 }
 0x3e7   : > { %v1152_v10 = vmul.f32 1.442695, %v1151_v8 }
 0x3e9   : > { %2605 = vpow2.f32 %v1152_v10 }
 0x3ef   : > { %v3075_v11 = vpop.eup %2605 }
 0x3f0   : > { %v1154_v12 = vsel %vm1147_vm1, %v3075_v11, 0.0 }
 0x3f1   : > { %1155 = vadd.xlane.f32.xlu0 %v1154_v12 }
 0x3f3   : > { %v1210_v17 = vpop.xlane.xlu1 %1209 }
 0x3f4   : > { %v1211_v29 = vsub.f32 %v3053_v40, %v1210_v17 }
 0x3f6   : > { %v1270_v13 = vpop.xlane.xlu2 %1269  ;;  %v1212_v34 = vmul.f32 1.442695, %v1211_v29 }
 0x3f7   : > { %v1271_v14 = vsub.f32 %v1267_v45, %v1270_v13 }
 0x3f9   : > { %v1272_v15 = vmul.f32 1.442695, %v1271_v14 }
 0x3fb   : > { %2607 = vpow2.f32 %v1272_v15 }
 0x401   : > { %v3079_v16 = vpop.eup %2607 }
 0x402   : > { %v1274_v61 = vsel %vm1147_vm1, %v3079_v16, 0.0 }
 0x403   : > { %1275 = vadd.xlane.f32.xlu2 %v1274_v61  ;;  %v1327_v39 = vpop.xlane.xlu0 %1326 }
 0x404   : > { %v1328_v42 = vsub.f32 %v3058_v50, %v1327_v39 }
 0x405   : > { %1337 = vrot.lane.b32.xlu0 %v1222_v6, %s2700_s18 }
 0x406   : > { %v1412_v18 = vpop.xlane.xlu2 %1411  ;;  %v1329_v45 = vmul.f32 1.442695, %v1328_v42 }
 0x407   : > { %v1413_v1 = vsub.f32 %v3062_v53, %v1412_v18 }
 0x409   : > { %v1414_v38 = vmul.f32 1.442695, %v1413_v1 }
 0x413   : > { %v1478_v19 = vpop.xlane.xlu1 %1477 }
 0x414   : > { %v1479_v20 = vsub.f32 %v1475_v57, %v1478_v19 }
 0x416   : > { %v1480_v21 = vmul.f32 1.442695, %v1479_v20  ;;  %v1535_v22 = vpop.xlane.xlu2 %1534 }
 0x417   : > { %v1536_v23 = vsub.f32 %v1532_v60, %v1535_v22 }
 0x418   : > { %2609 = vpow2.f32 %v1480_v21 }
 0x419   : > { %v1537_v26 = vmul.f32 1.442695, %v1536_v23 }
 0x41b   : > { %1280 = vrot.lane.b32.xlu2 %v1222_v6, %s2698_s11  ;;  %2611 = vpow2.f32 %v1537_v26 }
 0x41c   : > { %2613 = vpow2.f32 %v1212_v34 }
 0x41d   : > { %2615 = vpow2.f32 %v1414_v38 }
 0x41e   : > { %v3088_v30 = vpop.eup %2609  ;;  %2617 = vpow2.f32 %v1329_v45 }
 0x41f   : > { %v1482_v32 = vsel %vm1147_vm1, %v3088_v30, 0.0 }
 0x420   : > { %1483 = vadd.xlane.f32.xlu1 %v1482_v32 }
 0x421   : > { %v3093_v36 = vpop.eup %2611 }
 0x422   : > { %v1539_v37 = vsel %vm1147_vm1, %v3093_v36, 0.0  ;;  %v2614_v40 = vpop.eup %2613 }
 0x423   : > { %1488 = vrot.lane.b32.xlu2 %v1432_v35, %s2696_s28  ;;  %v1214_v43 = vsel %vm1147_vm1, %v2614_v40, 0.0  ;;  %v2616_v46 = vpop.eup %2615  ;;  %v1592_v44 = vpop.xlane.xlu1 %1591 }
 0x424   : > { %v1416_v47 = vsel %vm1147_vm1, %v2616_v46, 0.0  ;;  %v1593_v48 = vsub.f32 %v3068_v3, %v1592_v44  ;;  %v2618_v51 = vpop.eup %2617 }
 0x425   : > { %v1331_v50 = vsel %vm1147_vm1, %v2618_v51, 0.0 }
 0x426   : > { %v1594_v49 = vmul.f32 1.442695, %v1593_v48 }
 0x428   : > { %1540 = vadd.xlane.f32.xlu1 %v1539_v37  ;;  %2619 = vpow2.f32 %v1594_v49 }
 0x42e   : > { %v3105_v54 = vpop.eup %2619 }
 0x42f   : > { %1215 = vadd.xlane.f32.xlu0 %v1214_v43  ;;  %v1596_v55 = vsel %vm1147_vm1, %v3105_v54, 0.0 }
 0x437   : > { %1417 = vadd.xlane.f32.xlu0 %v1416_v47 }
 0x43b   : > { %v1224_v52 = vpop.permute.xlu1 %1223 }
 0x43c   : > { %v1229_v53 = vand.u32 %v1224_v52, %v3033_v9 }
 0x43e   : > { %1238 = vmatpush.bf16.msra.mxu2 %v1229_v53 }
 0x43f   : > { %1332 = vadd.xlane.f32.xlu0 %v1331_v50 }
 0x441   : > { %1545 = vrot.lane.b32.xlu1 %v1432_v35, %s2698_s11 }
 0x44c   : > { %1597 = vadd.xlane.f32.xlu2 %v1596_v55 }
 0x453   : > { %1602 = vrot.lane.b32.xlu0 %v1432_v35, %s2700_s18 }
 0x464   : > { %v1156_v56 = vpop.xlane.xlu0 %1155 }
 0x465   : > { %2621 = vrcp.f32 %v1156_v56 }
 0x46b   : > { %v2622_v57 = vpop.eup %2621 }
 0x46c   : > { %v1158_v58 = vmul.f32 %v2622_v57, %v3075_v11  ;;  %v2539_v57 = vld [vmem:[%s2779_s23 + $0x18] sm:$0xff] }
 0x46d   : > { %1683 = vmatpush.bf16.msra.mxu0 %v2539_v57  ;;  %v2595_v57 = vld [vmem:[%s2794_s19 + $0x2] ss:$0 sm:$0xff] }
 0x46e   : > { %v1159_v59 = vpack.c.bf16 %v1158_v58, %v1158_v58  ;;  %v2538_v58 = vld [vmem:[%s2779_s23 + $0x10] sm:$0xff] }
 0x470   : > { %2388 = vmatmul.msk.bf16.vlgmr.msrb.gmra.mxu2 %vm1160_vm2, %v1159_v59  ;;  %v2537_v59 = vld [vmem:[%s2779_s23 + $0x8] sm:$0xff] }
 0x471   : > { %1684 = vmatpush.bf16.msra.mxu0 %v2538_v58 }
 0x475   : > { %1685 = vmatpush.bf16.msra.mxu0 %v2537_v59 }
 0x476   : > { %v1276_v60 = vpop.xlane.xlu2 %1275 }
 0x477   : > { %2623 = vrcp.f32 %v1276_v60  ;;  %v1338_v62 = vpop.permute.xlu0 %1337  ;;  %v2536_v60 = vld [vmem:[%s2779_s23] sm:$0xff] }
 0x478   : > { %v1343_v63 = vand.u32 %v1338_v62, %v3033_v9 }
 0x479   : > { %1686 = vmatpush.bf16.msra.mxu0 %v2536_v60 }
 0x47a   : > { %1352 = vmatpush.bf16.msrb.mxu2 %v1343_v63 }
 0x47d   : > { %v2624_v0 = vpop.eup %2623 }
 0x47e   : > { %v1278_v2 = vmul.f32 %v2624_v0, %v3079_v16  ;;  %v1281_v3 = vpop.permute.xlu2 %1280 }
 0x47f   : > { %v1286_v4 = vand.u32 %v1281_v3, %v3033_v9 }
 0x480   : > { %v1279_v6 = vpack.c.bf16 %v1278_v2, %v1278_v2 }
 0x481   : > { %1295 = vmatpush.bf16.msrb.mxu1 %v1286_v4 }
 0x484   : > { %2392 = vmatmul.msk.bf16.vlgmr.msrb.gmra.mxu1 %vm1160_vm2, %v1279_v6 }
 0x485   : > { %1446 = vmatpush.bf16.msra.mxu1 %v1437_v5 }
 0x486   : > { %v1489_v11 = vpop.permute.xlu2 %1488 }
 0x487   : > { %v1494_v16 = vand.u32 %v1489_v11, %v3033_v9 }
 0x493   : > { %v1484_v7 = vpop.xlane.xlu1 %1483 }
 0x49b   : > { %v1541_v14 = vpop.xlane.xlu1 %1540 }
 0x4a2   : > { %v1216_v8 = vpop.xlane.xlu0 %1215 }
 0x4a3   : > { %2625 = vrcp.f32 %v1216_v8 }
 0x4a9   : > { %v2626_v10 = vpop.eup %2625 }
 0x4aa   : > { %v1218_v12 = vmul.f32 %v2626_v10, %v2614_v40  ;;  %v1418_v13 = vpop.xlane.xlu0 %1417 }
 0x4ab   : > { %2627 = vrcp.f32 %v1418_v13 }
 0x4ac   : > { %v1219_v15 = vpack.c.bf16 %v1218_v12, %v1218_v12 }
 0x4ae   : > { %2390 = vmatmul.msk.bf16.vlgmr.msra.gmra.mxu2 %vm1160_vm2, %v1219_v15 }
 0x4af   : > { %1503 = vmatpush.bf16.msra.mxu2 %v1494_v16 }
 0x4b1   : > { %v2628_v61 = vpop.eup %2627 }
 0x4b2   : > { %v1420_v17 = vmul.f32 %v2628_v61, %v2616_v46  ;;  %v1333_v18 = vpop.xlane.xlu0 %1332 }
 0x4b3   : > { %2629 = vrcp.f32 %v1333_v18  ;;  %v1546_v19 = vpop.permute.xlu1 %1545 }
 0x4b4   : > { %v1421_v20 = vpack.c.bf16 %v1420_v17, %v1420_v17  ;;  %v1551_v21 = vand.u32 %v1546_v19, %v3033_v9  ;;  %2631 = vrcp.f32 %v1541_v14  ;;  %v2594_v17 = vld [vmem:[%s2794_s19 + $0x4] ss:$0 sm:$0xff] }
 0x4b5   : > { %2633 = vrcp.f32 %v1484_v7 }
 0x4b6   : > { %2396 = vmatmul.msk.bf16.vlgmr.msra.gmra.mxu1 %vm1160_vm2, %v1421_v20 }
 0x4b7   : > { %1560 = vmatpush.bf16.msrb.mxu1 %v1551_v21 }
 0x4b9   : > { %v2630_v22 = vpop.eup %2629 }
 0x4ba   : > { %v1335_v23 = vmul.f32 %v2630_v22, %v2618_v51  ;;  %v2632_v25 = vpop.eup %2631 }
 0x4bb   : > { %v1543_v26 = vmul.f32 %v2632_v25, %v3093_v36  ;;  %v2634_v28 = vpop.eup %2633 }
 0x4bc   : > { %v1336_v24 = vpack.c.bf16 %v1335_v23, %v1335_v23  ;;  %v1486_v34 = vmul.f32 %v2634_v28, %v3088_v30 }
 0x4bd   : > { %v1544_v27 = vpack.c.bf16 %v1543_v26, %v1543_v26 }
 0x4be   : > { %2394 = vmatmul.msk.bf16.vlgmr.msrb.gmra.mxu2 %vm1160_vm2, %v1336_v24  ;;  %v1487_v35 = vpack.c.bf16 %v1486_v34, %v1486_v34 }
 0x4bf   : > { %v1598_v1 = vpop.xlane.xlu2 %1597 }
 0x4c0   : > { %2635 = vrcp.f32 %v1598_v1 }
 0x4c5   : > { %v1603_v29 = vpop.permute.xlu0 %1602 }
 0x4c6   : > { %v1608_v32 = vand.u32 %v1603_v29, %v3033_v9  ;;  %2400 = vmatmul.msk.bf16.vlgmr.msrb.gmra.mxu1 %vm1160_vm2, %v1544_v27  ;;  %v2636_v37 = vpop.eup %2635 }
 0x4c7   : > { %v1600_v38 = vmul.f32 %v2636_v37, %v3105_v54  ;;  %v2543_v37 = vld [vmem:[%s2784_s26 + $0x18] sm:$0xff] }
 0x4c8   : > { %1617 = vmatpush.bf16.msrb.mxu2 %v1608_v32  ;;  %1789 = vmatpush.bf16.msra.mxu1 %v2543_v37 }
 0x4c9   : > { %v1601_v39 = vpack.c.bf16 %v1600_v38, %v1600_v38  ;;  %v2542_v38 = vld [vmem:[%s2784_s26 + $0x10] sm:$0xff] }
 0x4cc   : > { %1790 = vmatpush.bf16.msra.mxu1 %v2542_v38 }
 0x4ce   : > { %2398 = vmatmul.msk.bf16.vlgmr.msra.gmra.mxu2 %vm1160_vm2, %v1487_v35 }
 0x4de   : > { %2402 = vmatmul.msk.bf16.vlgmr.msrb.gmra.mxu2 %vm1160_vm2, %v1601_v39  ;;  %v2541_v39 = vld [vmem:[%s2784_s26 + $0x8] sm:$0xff] }
 0x4df   : > { %1791 = vmatpush.bf16.msra.mxu1 %v2541_v39 }
 0x4f3   : > { %v1180_v36 = vpop.f32.mrf.mxu2 }
 0x4fb   : > { %v1182_v40 = vpop.f32.mrf.mxu2 }
 0x501   : > { %v1297_v42 = vpop.f32.mrf.mxu1 }
 0x509   : > { %v1299_v9 = vpop.f32.mrf.mxu1 }
 0x50a   : > { %v2540_v9 = vld [vmem:[%s2784_s26] sm:$0xff] }
 0x50b   : > { %1792 = vmatpush.bf16.msra.mxu1 %v2540_v9 }
 0x531   : > { %v1240_v43 = vpop.f32.mrf.mxu2 }
 0x533   : > { %v1448_v45 = vpop.f32.mrf.mxu1 }
 0x539   : > { %v1242_v46 = vpop.f32.mrf.mxu2 }
 0x53b   : > { %v1450_v30 = vpop.f32.mrf.mxu1 }
 0x541   : > { %v1354_v44 = vpop.f32.mrf.mxu2 }
 0x543   : > { %v1562_v47 = vpop.f32.mrf.mxu1 }
 0x544   : > { %v2582_v48 = vpack.i.bf16 %v1297_v42, %v1562_v47 }
 0x546   : > { %2583 = vrot.lane.b32.xlu0 %v2582_v48, %s2701_s21 }
 0x549   : > { %v1356_v51 = vpop.f32.mrf.mxu2 }
 0x54b   : > { %v1564_v52 = vpop.f32.mrf.mxu1 }
 0x551   : > { %v1505_v53 = vpop.f32.mrf.mxu2 }
 0x552   : > { %v2577_v49 = vpack.i.bf16 %v1240_v43, %v1505_v53 }
 0x554   : > { %2578 = vrot.lane.b32.xlu2 %v2577_v49, %s2695_s20 }
 0x559   : > { %v1507_v50 = vpop.f32.mrf.mxu2 }
 0x561   : > { %v1619_v54 = vpop.f32.mrf.mxu2 }
 0x562   : > { %v2587_v55 = vpack.i.bf16 %v1354_v44, %v1619_v54 }
 0x564   : > { %2588 = vrot.lane.b32.xlu1 %v2587_v55, %s2699_s12 }
 0x569   : > { %v1621_v56 = vpop.f32.mrf.mxu2 }
 0x5ae   : > { %v2579_v62 = vpop.permute.xlu2 %2578 }
 0x5af   : > { %v2580_v0 = vunpack.i.l.bf16 %v2579_v62  ;;  %v2581_v3 = vunpack.i.h.bf16 %v2579_v62  ;;  %v2596_v62 = vld [vmem:[%s2794_s19 + $0x3] ss:$0 sm:$0xff] }
 0x5b1   : > { %v1635_v6 = vsel %vm1126_vm0, %v1448_v45, %v2580_v0  ;;  %v1370_v11 = vsel %vm1126_vm0, %v1180_v36, %v2581_v3 }
 0x5b8   : > { %v2584_v63 = vpop.permute.xlu0 %2583 }
 0x5b9   : > { %v2585_v2 = vunpack.i.l.bf16 %v2584_v63  ;;  %v2586_v4 = vunpack.i.h.bf16 %v2584_v63 }
 0x5bb   : > { %v1636_v10 = vsel %vm1371_vm3, %v1635_v6, %v2585_v2  ;;  %v1372_v13 = vsel %vm1371_vm3, %v1370_v11, %v2586_v4  ;;  %v2597_v6 = vld [vmem:[%s2799_s3 + $0x1] ss:$0 sm:$0xff]  ;;  %v2551_v11 = vld [vmem:[%s2789_s29 + $0x38] sm:$0xff] }
 0x5bc   : > { %1944 = vmatpush.bf16.msra.mxu3 %v2551_v11 }
 0x5d6   : > { %v2589_v5 = vpop.permute.xlu1 %2588 }
 0x5d7   : > { %v2591_v7 = vunpack.i.h.bf16 %v2589_v5  ;;  %v2590_v8 = vunpack.i.l.bf16 %v2589_v5 }
 0x5d9   : > { %v1637_v12 = vsel %vm1373_vm4, %v1636_v10, %v2590_v8  ;;  %v1374_v15 = vsel %vm1373_vm4, %v1372_v13, %v2591_v7 }
 0x5da   : > { %v1639_v14 = vrot.slane %v1637_v12, 3 }
 0x5dc   : > { %v1642_v16 = vsel %vm1641_vm7, %v1374_v15, %v1639_v14  ;;  %v2550_v15 = vld [vmem:[%s2789_s29 + $0x30] sm:$0xff] }
 0x5dd   : > { %v1643_v61 = vpack.c.bf16 %v1639_v14, %v1642_v16  ;;  %1945 = vmatpush.bf16.msra.mxu3 %v2550_v15 }
 0x5df   : > { %2419 = vmatmul.msk.bf16.vlgmr.msra.gmra.mxu0 %vm975_vm5, %v1643_v61 }
 0x65c   : > { %v1688_v18 = vpop.f32.mrf.mxu0 }
 0x65d   : > { %v1693_v19 = vadd.f32 %v1688_v18, %v2967_v31  ;;  %v2549_v18 = vld [vmem:[%s2789_s29 + $0x28] sm:$0xff] }
 0x65e   : > { %1946 = vmatpush.bf16.msra.mxu3 %v2549_v18 }
 0x65f   : > { %v3141_v20 = vadd.f32 %v2594_v17, %v1693_v19 }
 0x661   : > { %v1698_v21 = vsel %vm975_vm5, %v3141_v20, 0.0 }
 0x662   : > { %1699 = vadd.xlane.f32.xlu0 %v1698_v21 }
 0x664   : > { %v1690_v22 = vpop.f32.mrf.mxu0 }
 0x665   : > { %v1694_v23 = vadd.f32 %v1690_v22, %v2971_v33  ;;  %v2548_v22 = vld [vmem:[%s2789_s29 + $0x20] sm:$0xff] }
 0x666   : > { %1947 = vmatpush.bf16.msra.mxu3 %v2548_v22 }
 0x667   : > { %v3146_v24 = vadd.f32 %v2594_v17, %v1694_v23 }
 0x669   : > { %v1701_v25 = vsel %vm979_vm6, %v3146_v24, 0.0 }
 0x66a   : > { %1702 = vadd.xlane.f32.xlu1 %v1701_v25 }
 0x6d5   : > { %v1700_v26 = vpop.xlane.xlu0 %1699 }
 0x6d6   : > { %v1704_v31 = vmul.f32 %v1700_v26, %v2975_v41 }
 0x6d8   : > { %v1706_v27 = vsub.f32 %v3141_v20, %v1704_v31 }
 0x6da   : > { %v1708_v28 = vmul.f32 %v1706_v27, %v1706_v27 }
 0x6dc   : > { %v1710_v29 = vsel %vm975_vm5, %v1708_v28, 0.0 }
 0x6dd   : > { %1711 = vadd.xlane.f32.xlu2 %v1710_v29  ;;  %v1703_v33 = vpop.xlane.xlu1 %1702 }
 0x6de   : > { %v1705_v32 = vmul.f32 %v1703_v33, %v2975_v41 }
 0x6e0   : > { %v1707_v34 = vsub.f32 %v3146_v24, %v1705_v32 }
 0x6e2   : > { %v1709_v35 = vmul.f32 %v1707_v34, %v1707_v34 }
 0x6e4   : > { %v1713_v1 = vsel %vm979_vm6, %v1709_v35, 0.0 }
 0x6e5   : > { %1714 = vadd.xlane.f32.xlu0 %v1713_v1 }
 0x750   : > { %v1712_v36 = vpop.xlane.xlu2 %1711 }
 0x751   : > { %v1716_v40 = vmul.f32 %v1712_v36, %v2975_v41 }
 0x753   : > { %v1718_v42 = vadd.f32 1e-12, %v1716_v40 }
 0x755   : > { %2637 = vrsqrt.f32 %v1718_v42  ;;  %vm1726_vm9 = vweird.f32 %v1718_v42 }
 0x758   : > { %v1715_v43 = vpop.xlane.xlu0 %1714 }
 0x759   : > { %v1717_v45 = vmul.f32 %v1715_v43, %v2975_v41 }
 0x75b   : > { %v2638_v46 = vpop.eup %2637  ;;  %v1719_v30 = vadd.f32 1e-12, %v1717_v45 }
 0x75c   : > { %v1721_v44 = vmul.f32 %v2638_v46, %v1718_v42  ;;  %vm1727_vm8 = vweird.f32 %v2638_v46  ;;  %v2545_v42 = vld [vmem:[%s2789_s29 + $0x8] sm:$0xff] }
 0x75d   : > { %2639 = vrsqrt.f32 %v1719_v30  ;;  %vm1728_vm10 = vmor %vm1726_vm9, %vm1727_vm8  ;;  %vm1736_vm12 = vweird.f32 %v1719_v30 }
 0x75e   : > { %v1722_v47 = vmul.f32 %v2638_v46, %v1721_v44 }
 0x760   : > { %v1723_v48 = vmul.f32 0.5, %v1722_v47 }
 0x762   : > { %v1724_v51 = vsub.f32 1.5, %v1723_v48  ;;  %v2544_v48 = vld [vmem:[%s2789_s29] sm:$0xff] }
 0x763   : > { %v2640_v52 = vpop.eup %2639 }
 0x764   : > { %v1725_v53 = vmul.f32 %v2638_v46, %v1724_v51  ;;  %v1731_v49 = vmul.f32 %v2640_v52, %v1719_v30  ;;  %vm1737_vm11 = vweird.f32 %v2640_v52 }
 0x765   : > { %vm1738_vm13 = vmor %vm1736_vm12, %vm1737_vm11 }
 0x766   : > { %v1732_v50 = vmul.f32 %v2640_v52, %v1731_v49  ;;  %v1729_v54 = vsel %vm1728_vm10, %v2638_v46, %v1725_v53 }
 0x767   : > { %v1740_v58 = vmul.f32 %v1729_v54, %v1706_v27  ;;  %v2547_v27 = vld [vmem:[%s2789_s29 + $0x18] sm:$0xff] }
 0x768   : > { %v1733_v55 = vmul.f32 0.5, %v1732_v50  ;;  %1948 = vmatpush.bf16.msra.mxu3 %v2547_v27 }
 0x769   : > { %v1743_v63 = vmul.f32 %v2595_v57, %v1740_v58 }
 0x76a   : > { %v1734_v56 = vsub.f32 1.5, %v1733_v55 }
 0x76b   : > { %v1746_v3 = vadd.f32 %v2596_v62, %v1743_v63 }
 0x76c   : > { %v1735_v59 = vmul.f32 %v2640_v52, %v1734_v56 }
 0x76e   : > { %v1739_v60 = vsel %vm1738_vm13, %v2640_v52, %v1735_v59 }
 0x76f   : > { %v1741_v0 = vmul.f32 %v1739_v60, %v1707_v34  ;;  %v2546_v34 = vld [vmem:[%s2789_s29 + $0x10] sm:$0xff] }
 0x770   : > { %1949 = vmatpush.bf16.msra.mxu3 %v2546_v34  ;;  %v2598_v34 = vld [vmem:[%s2794_s19 + $0x5] ss:$0 sm:$0xff] }
 0x771   : > { %v1744_v2 = vmul.f32 %v2595_v57, %v1741_v0 }
 0x773   : > { %v1747_v4 = vadd.f32 %v2596_v62, %v1744_v2 }
 0x774   : > { %1950 = vmatpush.bf16.msra.mxu3 %v2545_v42 }
 0x775   : > { %v1748_v5 = vpack.c.bf16 %v1747_v4, %v1746_v3 }
 0x777   : > { %2436 = vmatmul.msk.bf16.vlgmr.msra.gmra.mxu1 %vm975_vm5, %v1748_v5 }
 0x778   : > { %1951 = vmatpush.bf16.msra.mxu3 %v2544_v48 }
 0x7f4   : > { %v1794_v7 = vpop.f32.mrf.mxu1 }
 0x7f5   : > { %v3166_v8 = vadd.f32 %v2597_v6, %v1794_v7 }
 0x7f7   : > { %v3169_v10 = vmul.f32 0.70710677, %v3166_v8 }
 0x7f9   : > { %v1801_v12 = vand.u32 2147483647, %v3169_v10  ;;  %vm1867_vm8 = vcmp.ge.f32.partialorder %v3169_v10, 0.0 }
 0x7fb   : > { %v1803_v13 = vmul.f32 0.3275911, %v1801_v12  ;;  %v1855_v39 = vsub.f32 0.0, %v1801_v12 }
 0x7fc   : > { %v1796_v14 = vpop.f32.mrf.mxu1 }
 0x7fd   : > { %v1805_v16 = vadd.f32 1.0, %v1803_v13  ;;  %v3174_v61 = vadd.f32 %v2597_v6, %v1796_v14  ;;  %v1857_v46 = vmul.f32 %v1855_v39, %v1801_v12 }
 0x7ff   : > { %2641 = vrcp.f32 %v1805_v16  ;;  %v3177_v17 = vmul.f32 0.70710677, %v3174_v61  ;;  %v1818_v28 = vand.u32 2147483648, %v1805_v16  ;;  %v1816_v33 = vand.u32 2147483647, %v1805_v16 }
 0x800   : > { %vm1812_vm15 = vweird.f32 %v1805_v16  ;;  %v1859_v49 = vmul.f32 1.442695, %v1857_v46  ;;  %v1874_v27 = vmul.f32 0.5, %v3174_v61 }
 0x801   : > { %v1802_v19 = vand.u32 2147483647, %v3177_v17  ;;  %v1819_v35 = vor.u32 1.1754944e-38, %v1818_v28  ;;  %vm1817_vm1 = vcmp.eq.f32.partialorder %v1816_v33, 8.507059e+37  ;;  %vm1868_vm9 = vcmp.ge.f32.partialorder %v3177_v17, 0.0 }
 0x803   : > { %v1804_v21 = vmul.f32 0.3275911, %v1802_v19  ;;  %v1856_v56 = vsub.f32 0.0, %v1802_v19 }
 0x805   : > { %v2642_v23 = vpop.eup %2641  ;;  %v1806_v26 = vadd.f32 1.0, %v1804_v21  ;;  %v1858_v62 = vmul.f32 %v1856_v56, %v1802_v19 }
 0x806   : > { %v1808_v25 = vmul.f32 %v2642_v23, %v1805_v16  ;;  %vm1813_vm14 = vweird.f32 %v2642_v23 }
 0x807   : > { %2643 = vrcp.f32 %v1806_v26  ;;  %vm1814_vm0 = vmor %vm1812_vm15, %vm1813_vm14  ;;  %v1833_v45 = vand.u32 2147483648, %v1806_v26  ;;  %v1831_v44 = vand.u32 2147483647, %v1806_v26  ;;  %vm1827_vm3 = vweird.f32 %v1806_v26 }
 0x808   : > { %v1809_v31 = vsub.f32 1.0, %v1808_v25  ;;  %2645 = vpow2.f32 %v1859_v49  ;;  %v1861_v4 = vmul.f32 1.442695, %v1858_v62 }
 0x809   : > { %v1834_v53 = vor.u32 1.1754944e-38, %v1833_v45  ;;  %vm1832_vm7 = vcmp.eq.f32.partialorder %v1831_v44, 8.507059e+37 }
 0x80a   : > { %v1810_v29 = vmul.f32 %v2642_v23, %v1809_v31  ;;  %2647 = vpow2.f32 %v1861_v4  ;;  %v1873_v31 = vmul.f32 0.5, %v3166_v8 }
 0x80c   : > { %v1811_v32 = vadd.f32 %v2642_v23, %v1810_v29 }
 0x80d   : > { %v2644_v1 = vpop.eup %2643 }
 0x80e   : > { %v1815_v37 = vsel %vm1814_vm0, %v2642_v23, %v1811_v32  ;;  %v1823_v36 = vmul.f32 %v2644_v1, %v1806_v26  ;;  %vm1828_vm2 = vweird.f32 %v2644_v1  ;;  %v2646_v5 = vpop.eup %2645 }
 0x80f   : > { %v1820_v38 = vsel %vm1817_vm1, %v1819_v35, %v1815_v37  ;;  %vm1829_vm4 = vmor %vm1827_vm3, %vm1828_vm2 }
 0x810   : > { %v1837_v40 = vmul.f32 1.0614054, %v1820_v38  ;;  %v1824_v9 = vsub.f32 1.0, %v1823_v36  ;;  %v2648_v18 = vpop.eup %2647 }
 0x812   : > { %v1839_v43 = vadd.f32 -1.4531521, %v1837_v40  ;;  %v1825_v30 = vmul.f32 %v2644_v1, %v1824_v9 }
 0x814   : > { %v1841_v47 = vmul.f32 %v1839_v43, %v1820_v38  ;;  %v1826_v51 = vadd.f32 %v2644_v1, %v1825_v30 }
 0x816   : > { %v1843_v52 = vadd.f32 1.4214138, %v1841_v47  ;;  %v1830_v50 = vsel %vm1829_vm4, %v2644_v1, %v1826_v51 }
 0x817   : > { %v1835_v55 = vsel %vm1832_vm7, %v1834_v53, %v1830_v50 }
 0x818   : > { %v1845_v54 = vmul.f32 %v1843_v52, %v1820_v38  ;;  %v1838_v57 = vmul.f32 1.0614054, %v1835_v55 }
 0x81a   : > { %v1847_v58 = vadd.f32 -0.28449672, %v1845_v54  ;;  %v1840_v59 = vadd.f32 -1.4531521, %v1838_v57 }
 0x81c   : > { %v1849_v60 = vmul.f32 %v1847_v58, %v1820_v38  ;;  %v1842_v63 = vmul.f32 %v1840_v59, %v1835_v55 }
 0x81e   : > { %v1851_v0 = vadd.f32 0.2548296, %v1849_v60  ;;  %v1844_v2 = vadd.f32 1.4214138, %v1842_v63 }
 0x820   : > { %v1853_v3 = vmul.f32 %v1851_v0, %v1820_v38  ;;  %v1846_v6 = vmul.f32 %v1844_v2, %v1835_v55 }
 0x822   : > { %v1863_v7 = vmul.f32 %v2646_v5, %v1853_v3  ;;  %v1848_v11 = vadd.f32 -0.28449672, %v1846_v6 }
 0x824   : > { %v1865_v12 = vsub.f32 1.0, %v1863_v7  ;;  %v1850_v13 = vmul.f32 %v1848_v11, %v1835_v55 }
 0x826   : > { %v1852_v14 = vadd.f32 0.2548296, %v1850_v13  ;;  %v1869_v15 = vsub.f32 0.0, %v1865_v12 }
 0x828   : > { %v1854_v16 = vmul.f32 %v1852_v14, %v1835_v55  ;;  %v1871_v19 = vsel %vm1867_vm8, %v1865_v12, %v1869_v15 }
 0x829   : > { %v1875_v25 = vadd.f32 1.0, %v1871_v19 }
 0x82a   : > { %v1864_v21 = vmul.f32 %v2648_v18, %v1854_v16 }
 0x82b   : > { %v1877_v29 = vmul.f32 %v1875_v25, %v1873_v31 }
 0x82c   : > { %v1866_v22 = vsub.f32 1.0, %v1864_v21 }
 0x82e   : > { %v1870_v23 = vsub.f32 0.0, %v1866_v22 }
 0x830   : > { %v1872_v26 = vsel %vm1868_vm9, %v1866_v22, %v1870_v23 }
 0x831   : > { %v1876_v28 = vadd.f32 1.0, %v1872_v26 }
 0x833   : > { %v1878_v33 = vmul.f32 %v1876_v28, %v1874_v27 }
 0x835   : > { %v1879_v32 = vpack.c.bf16 %v1878_v33, %v1877_v29 }
 0x837   : > { %1952 = vmatmul.bf16.vlgmr.msra.gmra.mxu3 %v1879_v32 }
 0x8ba   : > { %v1953_v35 = vpop.f32.mrf.mxu3 }
 0x8bb   : > { %v1958_v10 = vadd.f32 %v1953_v35, %v3141_v20 }
 0x8bd   : > { %v1961_v1 = vadd.f32 %v2598_v34, %v1958_v10 }
 0x8bf   : > { %1963 = vst.msk [vmem:[#allocation2] sm:$0xff] %vm975_vm5, %v1961_v1 }
 0x8c2   : > { %v1955_v37 = vpop.f32.mrf.mxu3 }
 0x8c3   : > { %v1959_v17 = vadd.f32 %v1955_v37, %v3146_v24  ;;  %1968 = sbr.rel (%p2469_p5) target bundleno = 2648 (0xa58), region = 68 }
 0x8c5   : > { %v1962_v38 = vadd.f32 %v2598_v34, %v1959_v17 }
 0x8c7   : > { %1964 = vst.msk [vmem:[#allocation2 + $0x8] sm:$0x3] %vm979_vm6, %v1962_v38 }
 0x8c8   : > { %v1970_v8 = vrot.slane %v1961_v1, 4  ;;  %vm1972_vm10 = vcmask 1040384   ;;  %v2009_v24 = vld [vmem:[%s3250_s9 + $0x38] sm:$0xff]  ;;  %v2008_v43 = vld [vmem:[%s3250_s9 + $0x30] sm:$0xff]  ;;  %v2007_v45 = vld [vmem:[%s3250_s9 + $0x28] sm:$0xff]  ;;  %vm2035_vm13 = vcmask 9216  }
 0x8c9   : > { %2023 = vmatpush.msra.mxu0 %v2009_v24  ;;  %v2006_v46 = vld [vmem:[%s3250_s9 + $0x20] sm:$0xff]  ;;  %v2005_v30 = vld [vmem:[%s3250_s9 + $0x18] sm:$0xff]  ;;  %v2004_v44 = vld [vmem:[%s3250_s9 + $0x10] sm:$0xff] }
 0x8ca   : > { %v1973_v61 = vsel %vm1972_vm10, %v1961_v1, %v1970_v8  ;;  %v2003_v47 = vld [vmem:[%s3250_s9 + $0x8] sm:$0xff]  ;;  %v2002_v48 = vld [vmem:[%s3250_s9] sm:$0xff] }
 0x8cb   : > { %v1976_v39 = vsel %vm979_vm6, %v1973_v61, 0.0  ;;  %2024 = vmatpush.msra.mxu0 %v2008_v43  ;;  %v2649_v58 = vld [vmem:[%s3243_s2 + $0x7] ss:$0 sm:$0xff]  ;;  %v2651_v0 = vld [vmem:[%s3250_s9 + $0x40] ss:$0 sm:$0xff] }
 0x8cc   : > { %1977 = vadd.xlane.f32.xlu0 %v1976_v39 }
 0x8cd   : > { %2025 = vmatpush.msra.mxu0 %v2007_v45 }
 0x8cf   : > { %2026 = vmatpush.msra.mxu0 %v2006_v46 }
 0x8d1   : > { %2027 = vmatpush.msra.mxu0 %v2005_v30 }
 0x8d3   : > { %2028 = vmatpush.msra.mxu0 %v2004_v44 }
 0x8d5   : > { %2029 = vmatpush.msra.mxu0 %v2003_v47 }
 0x8d7   : > { %2030 = vmatpush.msra.mxu0 %v2002_v48 }
 0x93f   : > { %v1978_v36 = vpop.xlane.xlu0 %1977 }
 0x940   : > { %v1979_v20 = vmul.f32 %v1978_v36, %v2975_v41 }
 0x942   : > { %v1980_v40 = vsub.f32 %v1973_v61, %v1979_v20 }
 0x944   : > { %v1981_v42 = vmul.f32 %v1980_v40, %v1980_v40 }
 0x946   : > { %v1982_v9 = vsel %vm979_vm6, %v1981_v42, 0.0 }
 0x947   : > { %1983 = vadd.xlane.f32.xlu0 %v1982_v9 }
 0x9ba   : > { %v1984_v51 = vpop.xlane.xlu0 %1983 }
 0x9bb   : > { %v1985_v52 = vmul.f32 %v1984_v51, %v2975_v41  ;;  %v2650_v41 = vld [vmem:[%s3243_s2 + $0x8] ss:$0 sm:$0xff] }
 0x9bd   : > { %v1986_v53 = vadd.f32 1e-12, %v1985_v52 }
 0x9bf   : > { %2652 = vrsqrt.f32 %v1986_v53  ;;  %vm1993_vm11 = vweird.f32 %v1986_v53 }
 0x9c5   : > { %v2653_v49 = vpop.eup %2652 }
 0x9c6   : > { %v1988_v50 = vmul.f32 %v2653_v49, %v1986_v53  ;;  %vm1994_vm6 = vweird.f32 %v2653_v49 }
 0x9c7   : > { %vm1995_vm12 = vmor %vm1993_vm11, %vm1994_vm6 }
 0x9c8   : > { %v1989_v54 = vmul.f32 %v2653_v49, %v1988_v50 }
 0x9ca   : > { %v1990_v55 = vmul.f32 0.5, %v1989_v54 }
 0x9cc   : > { %v1991_v56 = vsub.f32 1.5, %v1990_v55 }
 0x9ce   : > { %v1992_v57 = vmul.f32 %v2653_v49, %v1991_v56 }
 0x9d0   : > { %v1996_v59 = vsel %vm1995_vm12, %v2653_v49, %v1992_v57 }
 0x9d1   : > { %v1997_v60 = vmul.f32 %v1996_v59, %v1980_v40 }
 0x9d3   : > { %v1999_v62 = vmul.f32 %v2649_v58, %v1997_v60 }
 0x9d5   : > { %v2001_v63 = vadd.f32 %v2650_v41, %v1999_v62 }
 0x9d7   : > { %2470 = vmatmul.msk.f32.vlgmr.msra.gmra.mxu0 %vm975_vm5, %v2001_v63 }
 0xa54   : > { %v2032_v2 = vpop.f32.mrf.mxu0 }
 0xa55   : > { %v2033_v3 = vadd.f32 %v2651_v0, %v2032_v2 }
 0xa57   : > { %2036 = vst.msk [vmem:[#allocation3] sm:$0x3] %vm2035_vm13, %v2033_v3 }
 0xa58 PF: > { %p2556_p6 = scmp.eq.s32.totalorder %s2765_s14, 1  ;;  %s2703_s29 = smov [#allocation3]  }
 0xa59   : > { %s2043_s19 = sshll.u32 %s2703_s29, 4  ;;  %s2045_s24 = sshll.u32 %s3251_s10, 4  ;;  %s2044_s19 = int_to_ptr.vmem [resolvable:$true] %s2043_s19  ;;  %s2046_s24 = int_to_ptr.hbm [resolvable:$true] %s2045_s24 }
 0xa5a   : > { %2553 = dma.vmem_to_hbm [thread:$0]  (%p2556_p6), %s2044_s19, 32, %s2046_s24, [#allocation4]  }
 0xa5b   : > { %2687 = dma.done.wait (%p2556_p6), [#allocation4], 32  }
 0xa5c   : > { %2689 = vsyncadd (%p2556_p6), [#allocation4], 4294967264 }
 0xa5d PF: > { %s21_s13 = sadd.s32 1, %s2692_s13  }
 0xa5e   : > { %p18_p7 = scmp.ge.s32.totalorder %s21_s13, 4  }
 0xa60   :  { %20 = sbr.rel (!%p18_p7) target bundleno = 3 (0x3), region = 110 }
 0xa65   :  { %2059 = vsyncpa [#allocation4], 1 }
 0xa66   :  { %2061 = vsyncpa [#allocation4 + $0x1], 1 }

</bundles_post_ra>
